<compile_context>
chip_gen: v7x
topology: tpu7x:2x2x1
jax: 0.10.0
libtpu: 0.0.40
codegen_flags: <defaults>
</compile_context>

<pallas_src>
import functools

import jax
import jax.numpy as jnp
from jax.experimental import pallas as pl
from jax.experimental.pallas import tpu as pltpu

INPUT_CHANNELS = 1
HIDDEN_CHANNELS = 32
NUM_CLASSES = 4

H_PAD = 128            # hidden channels padded to a full 128-lane width
C_PAD = 128            # class dim padded to a full lane width (lane-dense store)
G_PAD = 8              # graph (pool-row) dim padded to a full sublane
TM_MAX = 512
TM_MIN = 128
FUSE_MAX_N = 1024      # single fused kernel when n_pad <= this
_VMEM_LIMIT = 32 * 1024 * 1024


def _round_up(x, m):
    return ((x + m - 1) // m) * m


# ------------------------------ Pallas kernels ------------------------------

def _fused_kernel(a_ref, msg1_ref, root1_ref,
                  w2_rel_ref, w2_root_ref, b2_ref,
                  w3_rel_ref, w3_root_ref, b3_ref,
                  pool_ref, w_lin_ref, b_lin_ref,
                  out_ref):
    """Whole network in one kernel (small-graph fast path, all VMEM-resident)."""
    f32 = jnp.float32
    bf = jnp.bfloat16
    a = a_ref[...]                                            # (n_pad, n_pad) bf16

    # conv1: h1 = relu(A @ msg1 + root1)     (msg1/root1 precomputed in wrapper)
    h1 = jnp.maximum(
        jnp.dot(a, msg1_ref[...], preferred_element_type=f32) + root1_ref[...],
        0.0).astype(bf)

    # conv2 (weights folded as producer transform of h1)
    msg2 = jnp.dot(h1, w2_rel_ref[...], preferred_element_type=f32).astype(bf)
    root2 = jnp.dot(h1, w2_root_ref[...], preferred_element_type=f32) + b2_ref[...]
    h2 = jnp.maximum(
        jnp.dot(a, msg2, preferred_element_type=f32) + root2, 0.0).astype(bf)

    # conv3 (no relu)
    msg3 = jnp.dot(h2, w3_rel_ref[...], preferred_element_type=f32).astype(bf)
    root3 = jnp.dot(h2, w3_root_ref[...], preferred_element_type=f32) + b3_ref[...]
    h3 = jnp.dot(a, msg3, preferred_element_type=f32) + root3

    # global_mean_pool + Linear
    # TODO(synk): F.dropout(training=True) not reproduced; identity (eval mode).
    pooled = jnp.dot(pool_ref[...], h3.astype(bf),
                     preferred_element_type=f32).astype(bf)
    out_ref[...] = (jnp.dot(pooled, w_lin_ref[...], preferred_element_type=f32)
                    + b_lin_ref[...])


def _producer_layer_kernel(a_ref, msg_ref, root_ref,
                           w_rel_n_ref, w_root_n_ref, b_n_ref,
                           msg_out_ref, root_out_ref):
    """One GraphConv row-stripe + fold of NEXT layer's weight transforms.

    h      = relu(A_stripe @ msg + root)
    msg'   = h @ W_rel_next              (bf16)
    root'  = h @ W_root_next + b_next    (f32)
    """
    f32 = jnp.float32
    agg = jnp.dot(a_ref[...], msg_ref[...], preferred_element_type=f32)
    h = jnp.maximum(agg + root_ref[...], 0.0).astype(jnp.bfloat16)
    msg_out_ref[...] = jnp.dot(h, w_rel_n_ref[...],
                               preferred_element_type=f32).astype(jnp.bfloat16)
    root_out_ref[...] = (jnp.dot(h, w_root_n_ref[...], preferred_element_type=f32)
                         + b_n_ref[...])


def _final_layer_kernel(a_ref, msg_ref, root_ref, pool_ref,
                        w_lin_ref, b_lin_ref, out_ref, pooled_acc):
    """Layer 3 (no relu) with global_mean_pool + Linear fused into the epilogue.

    Row axis is a reduction for the pooled accumulator -> "arbitrary".
    """
    i = pl.program_id(0)

    @pl.when(i == 0)
    def _():
        pooled_acc[...] = jnp.zeros_like(pooled_acc)

    h3 = (jnp.dot(a_ref[...], msg_ref[...], preferred_element_type=jnp.float32)
          + root_ref[...])
    pooled_acc[...] += jnp.dot(pool_ref[...], h3.astype(jnp.bfloat16),
                               preferred_element_type=jnp.float32)

    @pl.when(i == pl.num_programs(0) - 1)
    def _():
        pooled = pooled_acc[...].astype(jnp.bfloat16)
        # TODO(synk): F.dropout(training=True) not reproduced; identity (eval).
        out_ref[...] = (jnp.dot(pooled, w_lin_ref[...],
                                preferred_element_type=jnp.float32)
                        + b_lin_ref[...])


# ------------------------------ kernel wrappers ------------------------------

def _choose_tm(n):
    """Row-stripe size: biggest that fits the VMEM budget, capped at n/4 so the
    'parallel' row axis can still split across v7x's two TensorCores."""
    n128 = _round_up(n, 128)
    budget = 24 * 1024 * 1024          # headroom under 32 MiB scoped default
    cap = max(TM_MIN, min(TM_MAX, n128 // 4))
    for cand in (512, 256, 128):
        if cand > cap:
            continue
        need = (2 * cand * n128 * 2            # double-buffered A stripes (bf16)
                + 2 * n128 * H_PAD * 2         # resident msg (bf16)
                + cand * H_PAD * (4 + 4 + 2 + 4))  # root-in + msg/root-out stripes
        if need <= budget:
            return cand
    return TM_MIN


def _fused_call(a_b, msg1, root1, p, pool_pad):
    n_pad = a_b.shape[0]
    g_pad = pool_pad.shape[0]
    cost = pl.CostEstimate(
        flops=3 * 2 * n_pad * n_pad * H_PAD + 4 * 2 * n_pad * H_PAD * H_PAD
        + 2 * g_pad * n_pad * H_PAD + 2 * g_pad * H_PAD * C_PAD,
        transcendentals=0,
        bytes_accessed=a_b.size * 2 + msg1.size * 2 + root1.size * 4
        + pool_pad.size * 2 + 4 * H_PAD * H_PAD * 2 + H_PAD * C_PAD * 2
        + g_pad * C_PAD * 4)
    return pl.pallas_call(
        _fused_kernel,
        out_shape=jax.ShapeDtypeStruct((g_pad, C_PAD), jnp.float32),
        compiler_params=pltpu.CompilerParams(vmem_limit_bytes=_VMEM_LIMIT),
        cost_estimate=cost,
    )(a_b, msg1, root1,
      p["w2_rel"], p["w2_root"], p["b2"],
      p["w3_rel"], p["w3_root"], p["b3"],
      pool_pad, p["w_lin"], p["b_lin"])


def _producer_layer_call(a_b, msg, root, w_rel_n, w_root_n, b_n, tm):
    n_pad = a_b.shape[0]
    grid = (n_pad // tm,)
    cost = pl.CostEstimate(
        flops=2 * n_pad * n_pad * H_PAD + 4 * n_pad * H_PAD * H_PAD,
        transcendentals=0,
        bytes_accessed=a_b.size * 2 + msg.size * 2 + root.size * 4
        + 2 * H_PAD * H_PAD * 2 + H_PAD * 4 + n_pad * H_PAD * (2 + 4))
    return pl.pallas_call(
        _producer_layer_kernel,
        out_shape=(jax.ShapeDtypeStruct((n_pad, H_PAD), jnp.bfloat16),
                   jax.ShapeDtypeStruct((n_pad, H_PAD), jnp.float32)),
        grid_spec=pltpu.PrefetchScalarGridSpec(
            num_scalar_prefetch=0,
            grid=grid,
            in_specs=[
                pl.BlockSpec((tm, n_pad), lambda i: (i, 0)),       # A row stripe
                pl.BlockSpec((n_pad, H_PAD), lambda i: (0, 0)),    # msg (resident)
                pl.BlockSpec((tm, H_PAD), lambda i: (i, 0)),       # root stripe
                pl.BlockSpec((H_PAD, H_PAD), lambda i: (0, 0)),    # W_rel (next)
                pl.BlockSpec((H_PAD, H_PAD), lambda i: (0, 0)),    # W_root (next)
                pl.BlockSpec((1, H_PAD), lambda i: (0, 0)),        # b (next)
            ],
            out_specs=(pl.BlockSpec((tm, H_PAD), lambda i: (i, 0)),
                       pl.BlockSpec((tm, H_PAD), lambda i: (i, 0)))),
        compiler_params=pltpu.CompilerParams(
            dimension_semantics=("parallel",),
            vmem_limit_bytes=_VMEM_LIMIT),
        cost_estimate=cost,
    )(a_b, msg, root, w_rel_n, w_root_n, b_n)


def _final_layer_call(a_b, msg, root, pool_pad, w_lin, b_lin, tm):
    n_pad = a_b.shape[0]
    g_pad = pool_pad.shape[0]
    grid = (n_pad // tm,)
    cost = pl.CostEstimate(
        flops=2 * n_pad * n_pad * H_PAD + 2 * g_pad * n_pad * H_PAD
        + 2 * g_pad * H_PAD * C_PAD,
        transcendentals=0,
        bytes_accessed=a_b.size * 2 + msg.size * 2 + root.size * 4
        + pool_pad.size * 2 + H_PAD * C_PAD * 2 + g_pad * C_PAD * 4)
    return pl.pallas_call(
        _final_layer_kernel,
        out_shape=jax.ShapeDtypeStruct((g_pad, C_PAD), jnp.float32),
        grid_spec=pltpu.PrefetchScalarGridSpec(
            num_scalar_prefetch=0,
            grid=grid,
            in_specs=[
                pl.BlockSpec((tm, n_pad), lambda i: (i, 0)),       # A row stripe
                pl.BlockSpec((n_pad, H_PAD), lambda i: (0, 0)),    # msg (resident)
                pl.BlockSpec((tm, H_PAD), lambda i: (i, 0)),       # root stripe
                pl.BlockSpec((g_pad, tm), lambda i: (0, i)),       # pool cols
                pl.BlockSpec((H_PAD, C_PAD), lambda i: (0, 0)),    # W_lin
                pl.BlockSpec((1, C_PAD), lambda i: (0, 0)),        # b_lin
            ],
            out_specs=pl.BlockSpec((g_pad, C_PAD), lambda i: (0, 0)),
            scratch_shapes=[pltpu.VMEM((g_pad, H_PAD), jnp.float32)]),
        compiler_params=pltpu.CompilerParams(
            dimension_semantics=("arbitrary",),
            vmem_limit_bytes=_VMEM_LIMIT),
        cost_estimate=cost,
    )(a_b, msg, root, pool_pad, w_lin, b_lin)


# ------------------------------ forward pass ---------------------------------

def _pad2(x, rows, cols):
    return jnp.pad(x, ((0, rows - x.shape[0]), (0, cols - x.shape[1])))


def _pad_params(params):
    bf = jnp.bfloat16
    return {
        "w1_rel":  _pad2(params["w1_rel"], INPUT_CHANNELS, H_PAD),
        "w1_root": _pad2(params["w1_root"], INPUT_CHANNELS, H_PAD),
        "b1":      _pad2(params["b1"], 1, H_PAD),
        "w2_rel":  _pad2(params["w2_rel"], H_PAD, H_PAD).astype(bf),
        "w2_root": _pad2(params["w2_root"], H_PAD, H_PAD).astype(bf),
        "b2":      _pad2(params["b2"], 1, H_PAD),
        "w3_rel":  _pad2(params["w3_rel"], H_PAD, H_PAD).astype(bf),
        "w3_root": _pad2(params["w3_root"], H_PAD, H_PAD).astype(bf),
        "b3":      _pad2(params["b3"], 1, H_PAD),
        "w_lin":   _pad2(params["w_lin"], H_PAD, C_PAD).astype(bf),
        "b_lin":   _pad2(params["b_lin"], 1, C_PAD),
    }


def _prepare(a, x, pool, n_pad, g_pad, params):
    p = _pad_params(params)
    a_b = _pad2(a, n_pad, n_pad).astype(jnp.bfloat16)
    x_p = jnp.pad(x, ((0, n_pad - a.shape[0]), (0, 0)))
    pool_p = _pad2(pool, g_pad, n_pad).astype(jnp.bfloat16)
    # conv1: in_channels == 1 so X @ W is a broadcast (f32 on the VPU); cast to
    # bf16 only for the MXU-side message operand.  Bias folded into root1.
    msg1 = (x_p * p["w1_rel"]).astype(jnp.bfloat16)       # (n_pad, H_PAD) bf16
    root1 = x_p * p["w1_root"] + p["b1"]                  # (n_pad, H_PAD) f32
    return p, a_b, pool_p, msg1, root1


def _forward_fused(a, x, params, pool):
    n, g = a.shape[0], pool.shape[0]
    n_pad = _round_up(n, 128)
    g_pad = _round_up(g, G_PAD)
    p, a_b, pool_p, msg1, root1 = _prepare(a, x, pool, n_pad, g_pad, params)
    out_pad = _fused_call(a_b, msg1, root1, p, pool_p)
    return out_pad[:g, :NUM_CLASSES]


def _forward_tiled(a, x, params, pool):
    n, g = a.shape[0], pool.shape[0]
    tm = _choose_tm(n)
    n_pad = _round_up(n, tm)
    g_pad = _round_up(g, G_PAD)
    p, a_b, pool_p, msg1, root1 = _prepare(a, x, pool, n_pad, g_pad, params)

    msg2, root2 = _producer_layer_call(a_b, msg1, root1,
                                       p["w2_rel"], p["w2_root"], p["b2"], tm)
    msg3, root3 = _producer_layer_call(a_b, msg2, root2,
                                       p["w3_rel"], p["w3_root"], p["b3"], tm)
    out_pad = _final_layer_call(a_b, msg3, root3, pool_p,
                                p["w_lin"], p["b_lin"], tm)
    return out_pad[:g, :NUM_CLASSES]


@functools.partial(jax.jit, static_argnames=("force_tiled",))
def gnn_forward(a, x, params, pool, force_tiled=False):
    """a: (N, N) f32 dense adjacency (a[i, j] = weight of edge j -> i),
       x: (N, 1) node features, pool: (G, N) mean-pool matrix."""
    n = a.shape[0]
    if (not force_tiled) and n <= FUSE_MAX_N:
        return _forward_fused(a, x, params, pool)
    return _forward_tiled(a, x, params, pool)


# ------------------------------ glue (plain JAX) -----------------------------

def dense_adjacency(edge_index, edge_weight, num_nodes):
    # TODO(synk): scatter-add densification kept in plain JAX; a block-sparse
    # scalar-prefetch formulation would be the win for truly large graphs.
    src = edge_index[0]
    dst = edge_index[1]
    w = (jnp.ones(src.shape, jnp.float32)
         if edge_weight is None else edge_weight.astype(jnp.float32))
    a = jnp.zeros((num_nodes, num_nodes), jnp.float32)
    return a.at[dst, src].add(w)          # A[i, j] += w  for edge j -> i


def mean_pool_matrix(batch, num_graphs, num_nodes):
    one_hot = (batch[None, :] == jnp.arange(num_graphs)[:, None]).astype(jnp.float32)
    counts = jnp.maximum(one_hot.sum(axis=1, keepdims=True), 1.0)
    return one_hot / counts               # (G, N)


def init_params(key, hidden, num_classes):
    ks = jax.random.split(key, 8)
    s = 0.1
    return {
        "w1_rel":  s * jax.random.normal(ks[0], (INPUT_CHANNELS, hidden), jnp.float32),
        "w1_root": s * jax.random.normal(ks[1], (INPUT_CHANNELS, hidden), jnp.float32),
        "b1":      jnp.zeros((1, hidden), jnp.float32),
        "w2_rel":  s * jax.random.normal(ks[2], (hidden, hidden), jnp.float32),
        "w2_root": s * jax.random.normal(ks[3], (hidden, hidden), jnp.float32),
        "b2":      jnp.zeros((1, hidden), jnp.float32),
        "w3_rel":  s * jax.random.normal(ks[4], (hidden, hidden), jnp.float32),
        "w3_root": s * jax.random.normal(ks[5], (hidden, hidden), jnp.float32),
        "b3":      jnp.zeros((1, hidden), jnp.float32),
        "w_lin":   s * jax.random.normal(ks[6], (hidden, num_classes), jnp.float32),
        "b_lin":   s * jax.random.normal(ks[7], (1, num_classes), jnp.float32),
    }


def reference_forward_f32(a, x, params, pool):
    h1 = jnp.maximum(a @ (x * params["w1_rel"]) + params["b1"]
                     + x * params["w1_root"], 0.0)
    h2 = jnp.maximum((a @ h1) @ params["w2_rel"] + params["b2"]
                     + h1 @ params["w2_root"], 0.0)
    h3 = (a @ h2) @ params["w3_rel"] + params["b3"] + h2 @ params["w3_root"]
    return (pool @ h3) @ params["w_lin"] + params["b_lin"]


def reference_forward_bf16(a, x, params, pool):
    """Mirrors the kernel exactly: weight transforms folded into the producer
    (A @ (H @ W) association) and bf16 casts at every MXU boundary."""
    bf, f32 = jnp.bfloat16, jnp.float32
    dot = functools.partial(jnp.dot, preferred_element_type=f32)
    a_b = a.astype(bf)
    msg1 = (x * params["w1_rel"]).astype(bf)
    root1 = x * params["w1_root"] + params["b1"]
    h1 = jnp.maximum(dot(a_b, msg1) + root1, 0.0).astype(bf)
    msg2 = dot(h1, params["w2_rel"].astype(bf)).astype(bf)
    root2 = dot(h1, params["w2_root"].astype(bf)) + params["b2"]
    h2 = jnp.maximum(dot(a_b, msg2) + root2, 0.0).astype(bf)
    msg3 = dot(h2, params["w3_rel"].astype(bf)).astype(bf)
    root3 = dot(h2, params["w3_root"].astype(bf)) + params["b3"]
    h3 = (dot(a_b, msg3) + root3).astype(bf)
    pooled = dot(pool.astype(bf), h3).astype(bf)
    return dot(pooled, params["w_lin"].astype(bf)) + params["b_lin"]


def _check(name, out, a, x, params, pool):
    ref_bf = reference_forward_bf16(a, x, params, pool)
    ref_f32 = reference_forward_f32(a, x, params, pool)
    assert out.shape == ref_f32.shape, f"{name}: bad shape {out.shape}"
    assert jnp.allclose(out, ref_bf, atol=3e-3, rtol=3e-3), \
        f"{name}: mismatch vs bf16-matched reference"
    assert jnp.allclose(out, ref_f32, atol=6e-2, rtol=6e-2), \
        f"{name}: mismatch vs f32 reference"


def _make_case(key, num_graphs, nodes_per_graph, edges_per_graph):
    num_nodes = num_graphs * nodes_per_graph
    kx, ke = jax.random.split(key)
    x = jax.random.normal(kx, (num_nodes, INPUT_CHANNELS), jnp.float32)
    srcs, dsts = [], []
    for gi in range(num_graphs):
        k1, k2, ke = jax.random.split(ke, 3)
        srcs.append(jax.random.randint(k1, (edges_per_graph,), 0, nodes_per_graph)
                    + gi * nodes_per_graph)
        dsts.append(jax.random.randint(k2, (edges_per_graph,), 0, nodes_per_graph)
                    + gi * nodes_per_graph)
    edge_index = jnp.stack([jnp.concatenate(srcs),
                            jnp.concatenate(dsts)]).astype(jnp.int32)
    batch = jnp.repeat(jnp.arange(num_graphs, dtype=jnp.int32), nodes_per_graph)
    a = dense_adjacency(edge_index, None, num_nodes)
    pool = mean_pool_matrix(batch, num_graphs, num_nodes)
    return a, x, pool


if __name__ == "__main__":
    key = jax.random.PRNGKey(0)
    k_p, k_c1, k_c2 = jax.random.split(key, 3)
    params = init_params(k_p, HIDDEN_CHANNELS, NUM_CLASSES)

    # Case 1: small graph batch (2 graphs x 128 nodes) -> fused single-kernel path.
    a1, x1, pool1 = _make_case(k_c1, num_graphs=2, nodes_per_graph=128,
                               edges_per_graph=512)
    out1 = jax.block_until_ready(gnn_forward(a1, x1, params, pool1))
    _check("fused", out1, a1, x1, params, pool1)

    # Case 2: larger batch (4 graphs x 256 nodes) forced through the tiled
    # resident-message / row-stripe path (exercises the multi-block grid,
    # producer-epilogue weight fold and the fused pool accumulator).
    a2, x2, pool2 = _make_case(k_c2, num_graphs=4, nodes_per_graph=256,
                               edges_per_graph=2048)
    out2 = jax.block_until_ready(gnn_forward(a2, x2, params, pool2,
                                             force_tiled=True))
    _check("tiled", out2, a2, x2, params, pool2)

    print("KERNEL_OK")
</pallas_src>

<mosaic_0001>
module attributes {stable_mosaic.version = 11 : i64} {
  func.func @_fused_kernel(%arg0: memref<256x256xbf16, #tpu.memory_space<vmem>>, %arg1: memref<256x128xbf16, #tpu.memory_space<vmem>>, %arg2: memref<256x128xf32, #tpu.memory_space<vmem>>, %arg3: memref<128x128xbf16, #tpu.memory_space<vmem>>, %arg4: memref<128x128xbf16, #tpu.memory_space<vmem>>, %arg5: memref<1x128xf32, #tpu.memory_space<vmem>>, %arg6: memref<128x128xbf16, #tpu.memory_space<vmem>>, %arg7: memref<128x128xbf16, #tpu.memory_space<vmem>>, %arg8: memref<1x128xf32, #tpu.memory_space<vmem>>, %arg9: memref<8x256xbf16, #tpu.memory_space<vmem>>, %arg10: memref<128x128xbf16, #tpu.memory_space<vmem>>, %arg11: memref<1x128xf32, #tpu.memory_space<vmem>>, %arg12: memref<8x128xf32, #tpu.memory_space<vmem>>) attributes {dimension_semantics = [], scalar_prefetch = 0 : i64, scratch_operands = 0 : i64, tpu.core_type = #tpu.core_type<tc>} {
    %c0 = arith.constant 0 : index
    %c0_0 = arith.constant 0 : index
    %0 = vector.load %arg0[%c0, %c0_0] : memref<256x256xbf16, #tpu.memory_space<vmem>>, vector<256x256xbf16>
    %c0_1 = arith.constant 0 : index
    %c0_2 = arith.constant 0 : index
    %1 = vector.load %arg1[%c0_1, %c0_2] : memref<256x128xbf16, #tpu.memory_space<vmem>>, vector<256x128xbf16>
    %cst = arith.constant dense<0.000000e+00> : vector<256x128xf32>
    %2 = tpu.matmul %0, %1, %cst {dimension_numbers = #tpu.dot_dimension_numbers<[1], [0], [0], [1], [0, 0, 1, 1], [], []>} : vector<256x256xbf16>, vector<256x128xbf16>, vector<256x128xf32> -> vector<256x128xf32>
    %c0_3 = arith.constant 0 : index
    %c0_4 = arith.constant 0 : index
    %3 = vector.load %arg2[%c0_3, %c0_4] : memref<256x128xf32, #tpu.memory_space<vmem>>, vector<256x128xf32>
    %4 = arith.addf %2, %3 : vector<256x128xf32>
    %cst_5 = arith.constant 0.000000e+00 : f32
    %5 = vector.broadcast %cst_5 : f32 to vector<256x128xf32>
    %6 = arith.maximumf %4, %5 : vector<256x128xf32>
    %7 = arith.truncf %6 : vector<256x128xf32> to vector<256x128xbf16>
    %c0_6 = arith.constant 0 : index
    %c0_7 = arith.constant 0 : index
    %8 = vector.load %arg3[%c0_6, %c0_7] : memref<128x128xbf16, #tpu.memory_space<vmem>>, vector<128x128xbf16>
    %cst_8 = arith.constant dense<0.000000e+00> : vector<256x128xf32>
    %9 = tpu.matmul %7, %8, %cst_8 {dimension_numbers = #tpu.dot_dimension_numbers<[1], [0], [0], [1], [0, 0, 1, 1], [], []>} : vector<256x128xbf16>, vector<128x128xbf16>, vector<256x128xf32> -> vector<256x128xf32>
    %10 = arith.truncf %9 : vector<256x128xf32> to vector<256x128xbf16>
    %c0_9 = arith.constant 0 : index
    %c0_10 = arith.constant 0 : index
    %11 = vector.load %arg4[%c0_9, %c0_10] : memref<128x128xbf16, #tpu.memory_space<vmem>>, vector<128x128xbf16>
    %cst_11 = arith.constant dense<0.000000e+00> : vector<256x128xf32>
    %12 = tpu.matmul %7, %11, %cst_11 {dimension_numbers = #tpu.dot_dimension_numbers<[1], [0], [0], [1], [0, 0, 1, 1], [], []>} : vector<256x128xbf16>, vector<128x128xbf16>, vector<256x128xf32> -> vector<256x128xf32>
    %c0_12 = arith.constant 0 : index
    %c0_13 = arith.constant 0 : index
    %13 = vector.load %arg5[%c0_12, %c0_13] : memref<1x128xf32, #tpu.memory_space<vmem>>, vector<1x128xf32>
    %14 = vector.broadcast %13 : vector<1x128xf32> to vector<256x128xf32>
    %15 = arith.addf %12, %14 : vector<256x128xf32>
    %cst_14 = arith.constant dense<0.000000e+00> : vector<256x128xf32>
    %16 = tpu.matmul %0, %10, %cst_14 {dimension_numbers = #tpu.dot_dimension_numbers<[1], [0], [0], [1], [0, 0, 1, 1], [], []>} : vector<256x256xbf16>, vector<256x128xbf16>, vector<256x128xf32> -> vector<256x128xf32>
    %17 = arith.addf %16, %15 : vector<256x128xf32>
    %cst_15 = arith.constant 0.000000e+00 : f32
    %18 = vector.broadcast %cst_15 : f32 to vector<256x128xf32>
    %19 = arith.maximumf %17, %18 : vector<256x128xf32>
    %20 = arith.truncf %19 : vector<256x128xf32> to vector<256x128xbf16>
    %c0_16 = arith.constant 0 : index
    %c0_17 = arith.constant 0 : index
    %21 = vector.load %arg6[%c0_16, %c0_17] : memref<128x128xbf16, #tpu.memory_space<vmem>>, vector<128x128xbf16>
    %cst_18 = arith.constant dense<0.000000e+00> : vector<256x128xf32>
    %22 = tpu.matmul %20, %21, %cst_18 {dimension_numbers = #tpu.dot_dimension_numbers<[1], [0], [0], [1], [0, 0, 1, 1], [], []>} : vector<256x128xbf16>, vector<128x128xbf16>, vector<256x128xf32> -> vector<256x128xf32>
    %23 = arith.truncf %22 : vector<256x128xf32> to vector<256x128xbf16>
    %c0_19 = arith.constant 0 : index
    %c0_20 = arith.constant 0 : index
    %24 = vector.load %arg7[%c0_19, %c0_20] : memref<128x128xbf16, #tpu.memory_space<vmem>>, vector<128x128xbf16>
    %cst_21 = arith.constant dense<0.000000e+00> : vector<256x128xf32>
    %25 = tpu.matmul %20, %24, %cst_21 {dimension_numbers = #tpu.dot_dimension_numbers<[1], [0], [0], [1], [0, 0, 1, 1], [], []>} : vector<256x128xbf16>, vector<128x128xbf16>, vector<256x128xf32> -> vector<256x128xf32>
    %c0_22 = arith.constant 0 : index
    %c0_23 = arith.constant 0 : index
    %26 = vector.load %arg8[%c0_22, %c0_23] : memref<1x128xf32, #tpu.memory_space<vmem>>, vector<1x128xf32>
    %27 = vector.broadcast %26 : vector<1x128xf32> to vector<256x128xf32>
    %28 = arith.addf %25, %27 : vector<256x128xf32>
    %cst_24 = arith.constant dense<0.000000e+00> : vector<256x128xf32>
    %29 = tpu.matmul %0, %23, %cst_24 {dimension_numbers = #tpu.dot_dimension_numbers<[1], [0], [0], [1], [0, 0, 1, 1], [], []>} : vector<256x256xbf16>, vector<256x128xbf16>, vector<256x128xf32> -> vector<256x128xf32>
    %30 = arith.addf %29, %28 : vector<256x128xf32>
    %c0_25 = arith.constant 0 : index
    %c0_26 = arith.constant 0 : index
    %31 = vector.load %arg9[%c0_25, %c0_26] : memref<8x256xbf16, #tpu.memory_space<vmem>>, vector<8x256xbf16>
    %32 = arith.truncf %30 : vector<256x128xf32> to vector<256x128xbf16>
    %cst_27 = arith.constant dense<0.000000e+00> : vector<8x128xf32>
    %33 = tpu.matmul %31, %32, %cst_27 {dimension_numbers = #tpu.dot_dimension_numbers<[1], [0], [0], [1], [0, 0, 1, 1], [], []>} : vector<8x256xbf16>, vector<256x128xbf16>, vector<8x128xf32> -> vector<8x128xf32>
    %34 = arith.truncf %33 : vector<8x128xf32> to vector<8x128xbf16>
    %c0_28 = arith.constant 0 : index
    %c0_29 = arith.constant 0 : index
    %35 = vector.load %arg10[%c0_28, %c0_29] : memref<128x128xbf16, #tpu.memory_space<vmem>>, vector<128x128xbf16>
    %cst_30 = arith.constant dense<0.000000e+00> : vector<8x128xf32>
    %36 = tpu.matmul %34, %35, %cst_30 {dimension_numbers = #tpu.dot_dimension_numbers<[1], [0], [0], [1], [0, 0, 1, 1], [], []>} : vector<8x128xbf16>, vector<128x128xbf16>, vector<8x128xf32> -> vector<8x128xf32>
    %c0_31 = arith.constant 0 : index
    %c0_32 = arith.constant 0 : index
    %37 = vector.load %arg11[%c0_31, %c0_32] : memref<1x128xf32, #tpu.memory_space<vmem>>, vector<1x128xf32>
    %38 = vector.broadcast %37 : vector<1x128xf32> to vector<8x128xf32>
    %39 = arith.addf %36, %38 : vector<8x128xf32>
    %c0_33 = arith.constant 0 : index
    %c0_34 = arith.constant 0 : index
    %40 = vector.load %arg12[%c0_33, %c0_34] : memref<8x128xf32, #tpu.memory_space<vmem>>, vector<8x128xf32>
    tpu.vector_store %arg12[%c0_33, %c0_34], %39 {strides = array<i32>} : memref<8x128xf32, #tpu.memory_space<vmem>>, vector<8x128xf32>,
    return
  }
}

</mosaic_0001>

<bundles_post_ra>
// kernel: gnn_forward.1
= control target key start
LH: loop header
LB: loop body
LE: loop exit
PB: predicated region body
PF: predicated region fallthrough
CT: control target
= control target key end

     0   :  { %vm3025_vm0 = vmmov 0   ;;  %s4124_s1 = inlined_call_operand.vmem [shape: bf16[256,128], index: 1, kind: input, shape index: {}]   ;;  %s4125_s0 = inlined_call_operand.vmem [shape: bf16[256,256], index: 0, kind: input, shape index: {}]   ;;  %s4126_s3 = inlined_call_operand.vmem [shape: bf16[128,128], index: 3, kind: input, shape index: {}]   ;;  %s4127_s4 = inlined_call_operand.vmem [shape: bf16[128,128], index: 4, kind: input, shape index: {}]   ;;  %s4128_s2 = inlined_call_operand.vmem [shape: f32[256,128], index: 2, kind: input, shape index: {}]   ;;  %s4129_s6 = inlined_call_operand.vmem [shape: bf16[128,128], index: 6, kind: input, shape index: {}]   ;;  %s4130_s5 = inlined_call_operand.vmem [shape: f32[1,128], index: 5, kind: input, shape index: {}]   ;;  %s4131_s7 = inlined_call_operand.vmem [shape: bf16[128,128], index: 7, kind: input, shape index: {}]   ;;  %s4132_s8 = inlined_call_operand.vmem [shape: f32[1,128], index: 8, kind: input, shape index: {}]   ;;  %s4133_s9 = inlined_call_operand.vmem [shape: bf16[8,256], index: 9, kind: input, shape index: {}]   ;;  %s4134_s10 = inlined_call_operand.vmem [shape: bf16[128,128], index: 10, kind: input, shape index: {}]   ;;  %s4135_s11 = inlined_call_operand.vmem [shape: f32[1,128], index: 11, kind: input, shape index: {}]   ;;  %s4136_s12 = inlined_call_operand.vmem [shape: f32[8,128], index: 12, kind: output, shape index: {}]  }
   0x1   :  { %v2886_v0 = vld [vmem:[%s4124_s1 + $0x40] sm:$0xff]   ;;  %v2888_v2 = vld [vmem:[%s4124_s1 + $0x48] sm:$0xff]   ;;  %v2890_v4 = vld [vmem:[%s4124_s1 + $0x50] sm:$0xff]  }
   0x2   :  { %v2887_v1 = vld [vmem:[%s4124_s1] sm:$0xff]   ;;  %2193 = vmatprep.subr.bf16.mxu0 %v2886_v0  ;;  %2868 = vmatprep.subr.bf16.mxu1 %v2886_v0  ;;  %v2889_v3 = vld [vmem:[%s4124_s1 + $0x8] sm:$0xff]   ;;  %v2891_v5 = vld [vmem:[%s4124_s1 + $0x10] sm:$0xff]  }
   0x3   :  { %2194 = vmatpush3.bf16.msra.mxu0 %v2887_v1  ;;  %2876 = vmatpush3.bf16.msra.mxu1 %v2887_v1  ;;  %v2892_v6 = vld [vmem:[%s4124_s1 + $0x58] sm:$0xff]   ;;  %v2894_v8 = vld [vmem:[%s4124_s1 + $0x60] sm:$0xff]   ;;  %v2896_v10 = vld [vmem:[%s4124_s1 + $0x68] sm:$0xff]  }
   0x4   :  { %2195 = vmatprep.subr.bf16.mxu0 %v2888_v2  ;;  %2869 = vmatprep.subr.bf16.mxu1 %v2888_v2  ;;  %v2893_v7 = vld [vmem:[%s4124_s1 + $0x18] sm:$0xff]   ;;  %v2895_v9 = vld [vmem:[%s4124_s1 + $0x20] sm:$0xff]   ;;  %v2897_v12 = vld [vmem:[%s4124_s1 + $0x28] sm:$0xff]  }
   0x5   :  { %v3127_v11 = vld [vmem:[%s4125_s0 + $0x4] ss:$8 sps:$4 sm:$0xff]   ;;  %v2898_v13 = vld [vmem:[%s4124_s1 + $0x70] sm:$0xff]   ;;  %v2900_v15 = vld [vmem:[%s4124_s1 + $0x78] sm:$0xff]  }
   0x6   :  { %426 = vmatprep.mubr.bf16.mxu0 %v3127_v11  ;;  %v2899_v14 = vld [vmem:[%s4124_s1 + $0x30] sm:$0xff]   ;;  %v2901_v16 = vld [vmem:[%s4124_s1 + $0x38] sm:$0xff]   ;;  %v3151_v18 = vld [vmem:[%s4125_s0] ss:$8 sps:$4 sm:$0xff]  }
   0x7   :  { %2196 = vmatpush3.bf16.msra.mxu0 %v2889_v3  ;;  %2877 = vmatpush3.bf16.msra.mxu1 %v2889_v3  ;;  %v2926_v17 = vld [vmem:[%s4125_s0 + $0xb4] ss:$8 sps:$4 sm:$0xff]   ;;  %v2928_v19 = vld [vmem:[%s4125_s0 + $0xb0] ss:$8 sps:$4 sm:$0xff]   ;;  %v2932_v21 = vld [vmem:[%s4125_s0 + $0xc4] ss:$8 sps:$4 sm:$0xff]  }
   0x8   :  { %2197 = vmatprep.subr.bf16.mxu0 %v2890_v4  ;;  %2870 = vmatprep.subr.bf16.mxu1 %v2890_v4  ;;  %v3159_v20 = vld [vmem:[%s4125_s0 + $0x14] ss:$8 sps:$4 sm:$0xff]   ;;  %v3169_v22 = vld [vmem:[%s4125_s0 + $0x10] ss:$8 sps:$4 sm:$0xff]   ;;  %v2934_v23 = vld [vmem:[%s4125_s0 + $0xc0] ss:$8 sps:$4 sm:$0xff]  }
   0x9   :  { %514 = vmatprep.mubr.bf16.mxu1 %v2926_v17  ;;  %v3177_v24 = vld [vmem:[%s4125_s0 + $0x24] ss:$8 sps:$4 sm:$0xff]   ;;  %v2938_v25 = vld [vmem:[%s4125_s0 + $0xd4] ss:$8 sps:$4 sm:$0xff]   ;;  %v3196_v29 = vld [vmem:[%s4125_s0 + $0x20] ss:$8 sps:$4 sm:$0xff]  }
   0xa   :  { %v2950_v26 = vld [vmem:[%s4126_s3] sm:$0xff]   ;;  %v2951_v27 = vld [vmem:[%s4126_s3 + $0x8] sm:$0xff]   ;;  %v2952_v28 = vld [vmem:[%s4126_s3 + $0x10] sm:$0xff]  }
   0xb   :  { %2198 = vmatpush3.bf16.msra.mxu0 %v2891_v5  ;;  %2878 = vmatpush3.bf16.msra.mxu1 %v2891_v5  ;;  %v2940_v30 = vld [vmem:[%s4125_s0 + $0xd0] ss:$8 sps:$4 sm:$0xff]   ;;  %v3204_v31 = vld [vmem:[%s4125_s0 + $0x34] ss:$8 sps:$4 sm:$0xff]   ;;  %v2944_v32 = vld [vmem:[%s4125_s0 + $0xe4] ss:$8 sps:$4 sm:$0xff]  }
   0xc   :  { %2199 = vmatprep.subr.bf16.mxu0 %v2892_v6  ;;  %2871 = vmatprep.subr.bf16.mxu1 %v2892_v6  ;;  %v3214_v33 = vld [vmem:[%s4125_s0 + $0x30] ss:$8 sps:$4 sm:$0xff]   ;;  %v2946_v34 = vld [vmem:[%s4125_s0 + $0xe0] ss:$8 sps:$4 sm:$0xff]   ;;  %v3222_v35 = vld [vmem:[%s4125_s0 + $0x44] ss:$8 sps:$4 sm:$0xff]  }
   0xd   :  { %v2947_v36 = vld [vmem:[%s4125_s0 + $0xf4] ss:$8 sps:$4 sm:$0xff]   ;;  %v3232_v37 = vld [vmem:[%s4125_s0 + $0x40] ss:$8 sps:$4 sm:$0xff]   ;;  %v3237_v38 = vld [vmem:[%s4125_s0 + $0xf0] ss:$8 sps:$4 sm:$0xff]  }
   0xe   :  { %v3242_v39 = vld [vmem:[%s4125_s0 + $0x54] ss:$8 sps:$4 sm:$0xff]   ;;  %v3250_v40 = vld [vmem:[%s4125_s0 + $0x50] ss:$8 sps:$4 sm:$0xff]   ;;  %v3255_v41 = vld [vmem:[%s4125_s0 + $0x64] ss:$8 sps:$4 sm:$0xff]  }
   0xf   :  { %2200 = vmatpush3.bf16.msra.mxu0 %v2893_v7  ;;  %2879 = vmatpush3.bf16.msra.mxu1 %v2893_v7  ;;  %v3262_v42 = vld [vmem:[%s4125_s0 + $0x60] ss:$8 sps:$4 sm:$0xff]   ;;  %v3267_v43 = vld [vmem:[%s4125_s0 + $0x74] ss:$8 sps:$4 sm:$0xff]   ;;  %v3274_v44 = vld [vmem:[%s4125_s0 + $0x70] ss:$8 sps:$4 sm:$0xff]  }
  0x10   :  { %2201 = vmatprep.subr.bf16.mxu0 %v2894_v8  ;;  %2872 = vmatprep.subr.bf16.mxu1 %v2894_v8  ;;  %v3279_v45 = vld [vmem:[%s4125_s0 + $0x84] ss:$8 sps:$4 sm:$0xff]   ;;  %v3286_v46 = vld [vmem:[%s4125_s0 + $0x80] ss:$8 sps:$4 sm:$0xff]   ;;  %v3291_v47 = vld [vmem:[%s4125_s0 + $0x94] ss:$8 sps:$4 sm:$0xff]  }
  0x11   :  { %v3298_v48 = vld [vmem:[%s4125_s0 + $0x90] ss:$8 sps:$4 sm:$0xff]   ;;  %v3303_v49 = vld [vmem:[%s4125_s0 + $0xa4] ss:$8 sps:$4 sm:$0xff]   ;;  %v3310_v50 = vld [vmem:[%s4125_s0 + $0xa0] ss:$8 sps:$4 sm:$0xff]  }
  0x12   :  { %v2953_v51 = vld [vmem:[%s4126_s3 + $0x18] sm:$0xff]   ;;  %v2954_v52 = vld [vmem:[%s4126_s3 + $0x20] sm:$0xff]   ;;  %v2955_v53 = vld [vmem:[%s4126_s3 + $0x28] sm:$0xff]  }
  0x13   :  { %2202 = vmatpush3.bf16.msra.mxu0 %v2895_v9  ;;  %2880 = vmatpush3.bf16.msra.mxu1 %v2895_v9  ;;  %v2956_v54 = vld [vmem:[%s4126_s3 + $0x30] sm:$0xff]   ;;  %v2957_v55 = vld [vmem:[%s4126_s3 + $0x38] sm:$0xff]   ;;  %v3332_v56 = vld [vmem:[%s4127_s4] sm:$0xff]  }
  0x14   :  { %2203 = vmatprep.subr.bf16.mxu0 %v2896_v10  ;;  %2873 = vmatprep.subr.bf16.mxu1 %v2896_v10  ;;  %v106_v59 = vld [vmem:[%s4128_s2] sm:$0xff]  ;;  %v128_v61 = vld [vmem:[%s4128_s2 + $0xb0] sm:$0xff]  ;;  %v107_v3 = vld [vmem:[%s4128_s2 + $0x8] sm:$0xff] }
  0x15   :  { %v129_v5 = vld [vmem:[%s4128_s2 + $0xb8] sm:$0xff] }
  0x17   :  { %2204 = vmatpush3.bf16.msra.mxu0 %v2897_v12  ;;  %2881 = vmatpush3.bf16.msra.mxu1 %v2897_v12 }
  0x18   :  { %2205 = vmatprep.subr.bf16.mxu0 %v2898_v13  ;;  %2874 = vmatprep.subr.bf16.mxu1 %v2898_v13 }
  0x1b   :  { %2206 = vmatpush3.bf16.msra.mxu0 %v2899_v14  ;;  %2882 = vmatpush3.bf16.msra.mxu1 %v2899_v14 }
  0x1c   :  { %2207 = vmatprep.subr.bf16.mxu0 %v2900_v15  ;;  %2875 = vmatprep.subr.bf16.mxu1 %v2900_v15 }
  0x1f   :  { %2208 = vmatpush3.bf16.msra.mxu0 %v2901_v16  ;;  %2883 = vmatpush3.bf16.msra.mxu1 %v2901_v16 }
  0x20   :  { %2656 = vmatprep.subr.bf16.mxu1 %v2950_v26 }
  0x22   :  { %427 = vmatmul.mubr.bf16.vlgmr.msra.gmra.mrb[0].mxu0 %v3151_v18  ;;  %515 = vmatmul.mubr.bf16.vlgmr.msra.gmra.mrb[0].mxu1 %v2928_v19 }
  0x23   :  { %434 = vmatprep.mubr.bf16.mxu0 %v3159_v20  ;;  %522 = vmatprep.mubr.bf16.mxu1 %v2932_v21  ;;  %v108_v21 = vld [vmem:[%s4128_s2 + $0x10] sm:$0xff] }
  0x24   :  { %2657 = vmatpush3.bf16.msra.mxu1 %v2950_v26 }
  0x25   :  { %2658 = vmatprep.subr.bf16.mxu1 %v2951_v27 }
  0x28   :  { %2659 = vmatpush3.bf16.msra.mxu1 %v2951_v27 }
  0x29   :  { %2660 = vmatprep.subr.bf16.mxu1 %v2952_v28 }
  0x2a   :  { %435 = vmatmul.mubr.bf16.gmra.mrb[4].mxu0 %v3169_v22  ;;  %523 = vmatmul.mubr.bf16.gmra.mrb[4].mxu1 %v2934_v23 }
  0x2b   :  { %442 = vmatprep.mubr.bf16.mxu0 %v3177_v24  ;;  %530 = vmatprep.mubr.bf16.mxu1 %v2938_v25  ;;  %v130_v25 = vld [vmem:[%s4128_s2 + $0xc0] sm:$0xff] }
  0x2c   :  { %2661 = vmatpush3.bf16.msra.mxu1 %v2952_v28 }
  0x2d   :  { %2662 = vmatprep.subr.bf16.mxu1 %v2953_v51 }
  0x30   :  { %2663 = vmatpush3.bf16.msra.mxu1 %v2953_v51  ;;  %v109_v51 = vld [vmem:[%s4128_s2 + $0x18] sm:$0xff] }
  0x31   :  { %2664 = vmatprep.subr.bf16.mxu1 %v2954_v52 }
  0x32   :  { %443 = vmatmul.mubr.bf16.gmra.mrb[8].mxu0 %v3196_v29  ;;  %531 = vmatmul.mubr.bf16.gmra.mrb[8].mxu1 %v2940_v30 }
  0x33   :  { %450 = vmatprep.mubr.bf16.mxu0 %v3204_v31  ;;  %538 = vmatprep.mubr.bf16.mxu1 %v2944_v32 }
  0x34   :  { %2665 = vmatpush3.bf16.msra.mxu1 %v2954_v52 }
  0x35   :  { %2666 = vmatprep.subr.bf16.mxu1 %v2955_v53 }
  0x38   :  { %2667 = vmatpush3.bf16.msra.mxu1 %v2955_v53  ;;  %v131_v53 = vld [vmem:[%s4128_s2 + $0xc8] sm:$0xff] }
  0x39   :  { %2668 = vmatprep.subr.bf16.mxu1 %v2956_v54 }
  0x3a   :  { %451 = vmatmul.mubr.bf16.gmra.mrb[12].mxu0 %v3214_v33  ;;  %539 = vmatmul.mubr.bf16.gmra.mrb[12].mxu1 %v2946_v34 }
  0x3b   :  { %458 = vmatprep.mubr.bf16.mxu0 %v3222_v35  ;;  %546 = vmatprep.mubr.bf16.mxu1 %v2947_v36 }
  0x3c   :  { %2669 = vmatpush3.bf16.msra.mxu1 %v2956_v54 }
  0x3d   :  { %2670 = vmatprep.subr.bf16.mxu1 %v2957_v55 }
  0x40   :  { %2671 = vmatpush3.bf16.msra.mxu1 %v2957_v55 }
  0x41   :  { %2704 = vmatprep.subr.bf16.mxu1 %v3332_v56 }
  0x42   :  { %459 = vmatmul.mubr.bf16.gmra.mrb[16].mxu0 %v3232_v37  ;;  %547 = vmatmul.mubr.bf16.gmra.mrb[16].mxu1 %v3237_v38 }
  0x43   :  { %466 = vmatprep.mubr.bf16.mxu0 %v3242_v39 }
  0x4a   :  { %467 = vmatmul.mubr.bf16.gmra.mrb[20].mxu0 %v3250_v40 }
  0x4b   :  { %474 = vmatprep.mubr.bf16.mxu0 %v3255_v41 }
  0x52   :  { %475 = vmatmul.mubr.bf16.gmra.mrb[24].mxu0 %v3262_v42 }
  0x53   :  { %482 = vmatprep.mubr.bf16.mxu0 %v3267_v43 }
  0x5a   :  { %483 = vmatmul.mubr.bf16.gmra.mrb[28].mxu0 %v3274_v44 }
  0x5b   :  { %490 = vmatprep.mubr.bf16.mxu0 %v3279_v45 }
  0x62   :  { %491 = vmatmul.mubr.bf16.gmra.mrb[32].mxu0 %v3286_v46 }
  0x63   :  { %498 = vmatprep.mubr.bf16.mxu0 %v3291_v47 }
  0x6a   :  { %499 = vmatmul.mubr.bf16.gmra.mrb[36].mxu0 %v3298_v48 }
  0x6b   :  { %506 = vmatprep.mubr.bf16.mxu0 %v3303_v49 }
  0x72   :  { %507 = vmatmul.mubr.bf16.gmra.mrb[40].mxu0 %v3310_v50 }
  0x73   :  { %1108 = vmatprep.mubr.bf16.mxu0 %v3127_v11 }
  0xf5   :  { %v2209_v57 = vpop.f32.mrb[0].mxu0  ;;  %v2275_v58 = vpop.f32.mrb[0].mxu1 }
  0xf6   :  { %v2210_v60 = vpop.f32.mrb[1].mxu0  ;;  %v2276_v62 = vpop.f32.mrb[1].mxu1 }
  0xf7   :  { %v2211_v63 = vadd.f32 %v2210_v60, %v2209_v57  ;;  %v2212_v0 = vpop.f32.mrb[2].mxu0  ;;  %v2277_v1 = vadd.f32 %v2276_v62, %v2275_v58  ;;  %v2278_v2 = vpop.f32.mrb[2].mxu1 }
  0xf8   :  { %v2213_v4 = vpop.f32.mrb[3].mxu0  ;;  %v2279_v6 = vpop.f32.mrb[3].mxu1 }
  0xf9   :  { %v429_v7 = vadd.f32 %v2211_v63, %v106_v59  ;;  %v2214_v8 = vadd.f32 %v2213_v4, %v2212_v0  ;;  %v517_v9 = vadd.f32 %v2277_v1, %v128_v61  ;;  %v2280_v10 = vadd.f32 %v2279_v6, %v2278_v2  ;;  %v110_v4 = vld [vmem:[%s4128_s2 + $0x20] sm:$0xff]  ;;  %v132_v6 = vld [vmem:[%s4128_s2 + $0xd0] sm:$0xff] }
  0xfb   :  { %v432_v11 = vadd.f32 %v2214_v8, %v107_v3  ;;  %v577_v12 = vmax.f32 %v517_v9, 0.0  ;;  %v520_v13 = vadd.f32 %v2280_v10, %v129_v5  ;;  %v555_v14 = vmax.f32 %v429_v7, 0.0 }
  0xfd   :  { %v556_v15 = vmax.f32 %v432_v11, 0.0  ;;  %v2215_v16 = vpop.f32.mrb[4].mxu0  ;;  %v578_v17 = vmax.f32 %v520_v13, 0.0  ;;  %v2281_v19 = vpop.f32.mrb[4].mxu1  ;;  %v2959_v13 = vld [vmem:[%s4127_s4 + $0x8] sm:$0xff]  }
  0xfe   :  { %v2216_v23 = vpop.f32.mrb[5].mxu0  ;;  %v2282_v26 = vpop.f32.mrb[5].mxu1 }
  0xff   :  { %v2217_v27 = vadd.f32 %v2216_v23, %v2215_v16  ;;  %v2218_v28 = vpop.f32.mrb[6].mxu0  ;;  %v3353_v30 = vpack.c.bf16 %v556_v15, %v555_v14  ;;  %v2283_v32 = vadd.f32 %v2282_v26, %v2281_v19  ;;  %v2284_v34 = vpop.f32.mrb[6].mxu1  ;;  %v3355_v36 = vpack.c.bf16 %v578_v17, %v577_v12  ;;  %v111_v15 = vld [vmem:[%s4128_s2 + $0x28] sm:$0xff]  ;;  %v133_v17 = vld [vmem:[%s4128_s2 + $0xd8] sm:$0xff] }
 0x100   :  { %v2219_v52 = vpop.f32.mrb[7].mxu0  ;;  %v2285_v54 = vpop.f32.mrb[7].mxu1 }
 0x101   :  { %v437_v55 = vadd.f32 %v2217_v27, %v108_v21  ;;  %v2220_v57 = vadd.f32 %v2219_v52, %v2218_v28  ;;  %2672 = vmatprep.mubr.bf16.mxu1 %v3353_v30  ;;  %v525_v58 = vadd.f32 %v2283_v32, %v130_v25  ;;  %v2286_v59 = vadd.f32 %v2285_v54, %v2284_v34  ;;  %v2960_v34 = vld [vmem:[%s4127_s4 + $0x10] sm:$0xff]  }
 0x103   :  { %v440_v60 = vadd.f32 %v2220_v57, %v109_v51  ;;  %v579_v61 = vmax.f32 %v525_v58, 0.0  ;;  %v528_v62 = vadd.f32 %v2286_v59, %v131_v53  ;;  %v557_v63 = vmax.f32 %v437_v55, 0.0  ;;  %v112_v57 = vld [vmem:[%s4128_s2 + $0x30] sm:$0xff] }
 0x105   :  { %v558_v0 = vmax.f32 %v440_v60, 0.0  ;;  %v2221_v1 = vpop.f32.mrb[8].mxu0  ;;  %v580_v2 = vmax.f32 %v528_v62, 0.0  ;;  %v2287_v3 = vpop.f32.mrb[8].mxu1 }
 0x106   :  { %v2222_v5 = vpop.f32.mrb[9].mxu0  ;;  %v2288_v7 = vpop.f32.mrb[9].mxu1 }
 0x107   :  { %v3370_v8 = vpack.c.bf16 %v558_v0, %v557_v63  ;;  %v2223_v9 = vadd.f32 %v2222_v5, %v2221_v1  ;;  %v2224_v10 = vpop.f32.mrb[10].mxu0  ;;  %v2289_v11 = vadd.f32 %v2288_v7, %v2287_v3  ;;  %v2290_v12 = vpop.f32.mrb[10].mxu1  ;;  %v3375_v14 = vpack.c.bf16 %v580_v2, %v579_v61  ;;  %v2961_v1 = vld [vmem:[%s4127_s4 + $0x18] sm:$0xff]   ;;  %v135_v5 = vld [vmem:[%s4128_s2 + $0xe8] sm:$0xff] }
 0x108   :  { %v2225_v16 = vpop.f32.mrb[11].mxu0  ;;  %v2291_v19 = vpop.f32.mrb[11].mxu1  ;;  %v113_v3 = vld [vmem:[%s4128_s2 + $0x38] sm:$0xff] }
 0x109   :  { %v445_v21 = vadd.f32 %v2223_v9, %v110_v4  ;;  %v2226_v23 = vadd.f32 %v2225_v16, %v2224_v10  ;;  %2673 = vmatmul.mubr.bf16.vlgmr.msra.gmra.mrb[20].mxu1 %v3370_v8  ;;  %v533_v25 = vadd.f32 %v2289_v11, %v132_v6  ;;  %v2292_v26 = vadd.f32 %v2291_v19, %v2290_v12  ;;  %v2962_v16 = vld [vmem:[%s4127_s4 + $0x20] sm:$0xff]  }
 0x10a   :  { %2705 = vmatpush3.bf16.msra.mxu1 %v3332_v56  ;;  %v134_v56 = vld [vmem:[%s4128_s2 + $0xe0] sm:$0xff] }
 0x10b   :  { %v448_v27 = vadd.f32 %v2226_v23, %v111_v15  ;;  %v581_v28 = vmax.f32 %v533_v25, 0.0  ;;  %v536_v32 = vadd.f32 %v2292_v26, %v133_v17  ;;  %2706 = vmatprep.subr.bf16.mxu1 %v2959_v13  ;;  %v559_v51 = vmax.f32 %v445_v21, 0.0  ;;  %v114_v26 = vld [vmem:[%s4128_s2 + $0x40] sm:$0xff] }
 0x10d   :  { %v560_v52 = vmax.f32 %v448_v27, 0.0  ;;  %v2227_v53 = vpop.f32.mrb[12].mxu0  ;;  %v582_v54 = vmax.f32 %v536_v32, 0.0  ;;  %v2293_v55 = vpop.f32.mrb[12].mxu1 }
 0x10e   :  { %v2228_v58 = vpop.f32.mrb[13].mxu0  ;;  %v2294_v59 = vpop.f32.mrb[13].mxu1  ;;  %2707 = vmatpush3.bf16.msra.mxu1 %v2959_v13 }
 0x10f   :  { %v2229_v60 = vadd.f32 %v2228_v58, %v2227_v53  ;;  %v2230_v61 = vpop.f32.mrb[14].mxu0  ;;  %v3394_v62 = vpack.c.bf16 %v560_v52, %v559_v51  ;;  %v2295_v63 = vadd.f32 %v2294_v59, %v2293_v55  ;;  %v2296_v0 = vpop.f32.mrb[14].mxu1  ;;  %2708 = vmatprep.subr.bf16.mxu1 %v2960_v34  ;;  %v3399_v2 = vpack.c.bf16 %v582_v54, %v581_v28  ;;  %v136_v28 = vld [vmem:[%s4128_s2 + $0xf0] sm:$0xff]  ;;  %v115_v58 = vld [vmem:[%s4128_s2 + $0x48] sm:$0xff]  ;;  %v137_v59 = vld [vmem:[%s4128_s2 + $0xf8] sm:$0xff] }
 0x110   :  { %v2231_v4 = vpop.f32.mrb[15].mxu0  ;;  %v2297_v6 = vpop.f32.mrb[15].mxu1 }
 0x111   :  { %v453_v7 = vadd.f32 %v2229_v60, %v112_v57  ;;  %v2232_v9 = vadd.f32 %v2231_v4, %v2230_v61  ;;  %2676 = vmatprep.mubr.bf16.mxu1 %v3394_v62  ;;  %v541_v10 = vadd.f32 %v2295_v63, %v134_v56  ;;  %v2298_v11 = vadd.f32 %v2297_v6, %v2296_v0  ;;  %v2963_v57 = vld [vmem:[%s4127_s4 + $0x28] sm:$0xff]   ;;  %v2964_v6 = vld [vmem:[%s4127_s4 + $0x30] sm:$0xff]  }
 0x112   :  { %2709 = vmatpush3.bf16.msra.mxu1 %v2960_v34 }
 0x113   :  { %v456_v12 = vadd.f32 %v2232_v9, %v113_v3  ;;  %v583_v13 = vmax.f32 %v541_v10, 0.0  ;;  %v544_v15 = vadd.f32 %v2298_v11, %v135_v5  ;;  %2710 = vmatprep.subr.bf16.mxu1 %v2961_v1  ;;  %v561_v17 = vmax.f32 %v453_v7, 0.0 }
 0x115   :  { %v562_v19 = vmax.f32 %v456_v12, 0.0  ;;  %v2233_v21 = vpop.f32.mrb[16].mxu0  ;;  %v584_v23 = vmax.f32 %v544_v15, 0.0  ;;  %v2299_v25 = vpop.f32.mrb[16].mxu1  ;;  %v116_v12 = vld [vmem:[%s4128_s2 + $0x50] sm:$0xff] }
 0x116   :  { %v2234_v27 = vpop.f32.mrb[17].mxu0  ;;  %v2300_v32 = vpop.f32.mrb[17].mxu1  ;;  %2711 = vmatpush3.bf16.msra.mxu1 %v2961_v1 }
 0x117   :  { %v2235_v34 = vadd.f32 %v2234_v27, %v2233_v21  ;;  %v2236_v51 = vpop.f32.mrb[18].mxu0  ;;  %v3417_v52 = vpack.c.bf16 %v562_v19, %v561_v17  ;;  %v2301_v53 = vadd.f32 %v2300_v32, %v2299_v25  ;;  %v2302_v54 = vpop.f32.mrb[18].mxu1  ;;  %2712 = vmatprep.subr.bf16.mxu1 %v2962_v16  ;;  %v3419_v55 = vpack.c.bf16 %v584_v23, %v583_v13  ;;  %v2965_v21 = vld [vmem:[%s4127_s4 + $0x38] sm:$0xff]  }
 0x118   :  { %v2237_v56 = vpop.f32.mrb[19].mxu0  ;;  %v2303_v60 = vpop.f32.mrb[19].mxu1  ;;  %v117_v23 = vld [vmem:[%s4128_s2 + $0x58] sm:$0xff] }
 0x119   :  { %v461_v61 = vadd.f32 %v2235_v34, %v114_v26  ;;  %v2238_v63 = vadd.f32 %v2237_v56, %v2236_v51  ;;  %2677 = vmatmul.mubr.bf16.gmra.mrb[24].mxu1 %v3417_v52  ;;  %v549_v0 = vadd.f32 %v2301_v53, %v136_v28  ;;  %v2304_v1 = vadd.f32 %v2303_v60, %v2302_v54  ;;  %v118_v53 = vld [vmem:[%s4128_s2 + $0x60] sm:$0xff] }
 0x11a   :  { %2713 = vmatpush3.bf16.msra.mxu1 %v2962_v16 }
 0x11b   :  { %v464_v3 = vadd.f32 %v2238_v63, %v115_v58  ;;  %v585_v4 = vmax.f32 %v549_v0, 0.0  ;;  %v552_v5 = vadd.f32 %v2304_v1, %v137_v59  ;;  %2714 = vmatprep.subr.bf16.mxu1 %v2963_v57  ;;  %v563_v7 = vmax.f32 %v461_v61, 0.0  ;;  %v119_v59 = vld [vmem:[%s4128_s2 + $0x68] sm:$0xff] }
 0x11d   :  { %v564_v9 = vmax.f32 %v464_v3, 0.0  ;;  %v2239_v10 = vpop.f32.mrb[20].mxu0  ;;  %v586_v11 = vmax.f32 %v552_v5, 0.0  ;;  %v120_v5 = vld [vmem:[%s4128_s2 + $0x70] sm:$0xff] }
 0x11e   :  { %v2240_v13 = vpop.f32.mrb[21].mxu0  ;;  %2715 = vmatpush3.bf16.msra.mxu1 %v2963_v57 }
 0x11f   :  { %v2241_v15 = vadd.f32 %v2240_v13, %v2239_v10  ;;  %v2242_v16 = vpop.f32.mrb[22].mxu0  ;;  %v3437_v17 = vpack.c.bf16 %v564_v9, %v563_v7  ;;  %v3439_v19 = vpack.c.bf16 %v586_v11, %v585_v4  ;;  %2716 = vmatprep.subr.bf16.mxu1 %v2964_v6  ;;  %v121_v11 = vld [vmem:[%s4128_s2 + $0x78] sm:$0xff] }
 0x120   :  { %v2243_v25 = vpop.f32.mrb[23].mxu0 }
 0x121   :  { %v469_v26 = vadd.f32 %v2241_v15, %v116_v12  ;;  %v2244_v27 = vadd.f32 %v2243_v25, %v2242_v16  ;;  %2680 = vmatprep.mubr.bf16.mxu1 %v3437_v17 }
 0x122   :  { %2717 = vmatpush3.bf16.msra.mxu1 %v2964_v6 }
 0x123   :  { %v472_v28 = vadd.f32 %v2244_v27, %v117_v23  ;;  %2718 = vmatprep.subr.bf16.mxu1 %v2965_v21  ;;  %v565_v32 = vmax.f32 %v469_v26, 0.0  ;;  %v122_v26 = vld [vmem:[%s4128_s2 + $0x80] sm:$0xff] }
 0x125   :  { %v566_v34 = vmax.f32 %v472_v28, 0.0  ;;  %v2245_v51 = vpop.f32.mrb[24].mxu0 }
 0x126   :  { %v2246_v54 = vpop.f32.mrb[25].mxu0  ;;  %2719 = vmatpush3.bf16.msra.mxu1 %v2965_v21 }
 0x127   :  { %v2247_v57 = vadd.f32 %v2246_v54, %v2245_v51  ;;  %v2248_v58 = vpop.f32.mrb[26].mxu0  ;;  %v3451_v56 = vpack.c.bf16 %v566_v34, %v565_v32  ;;  %v123_v51 = vld [vmem:[%s4128_s2 + $0x88] sm:$0xff] }
 0x128   :  { %v2249_v60 = vpop.f32.mrb[27].mxu0 }
 0x129   :  { %v477_v61 = vadd.f32 %v2247_v57, %v118_v53  ;;  %v2250_v63 = vadd.f32 %v2249_v60, %v2248_v58  ;;  %2681 = vmatmul.mubr.bf16.gmra.mrb[28].mxu1 %v3451_v56 }
 0x12b   :  { %v480_v0 = vadd.f32 %v2250_v63, %v119_v59  ;;  %v567_v1 = vmax.f32 %v477_v61, 0.0  ;;  %v124_v63 = vld [vmem:[%s4128_s2 + $0x90] sm:$0xff] }
 0x12d   :  { %v568_v3 = vmax.f32 %v480_v0, 0.0  ;;  %v2251_v4 = vpop.f32.mrb[28].mxu0 }
 0x12e   :  { %v2252_v6 = vpop.f32.mrb[29].mxu0 }
 0x12f   :  { %v2253_v7 = vadd.f32 %v2252_v6, %v2251_v4  ;;  %v2254_v9 = vpop.f32.mrb[30].mxu0  ;;  %v3460_v10 = vpack.c.bf16 %v568_v3, %v567_v1 }
 0x130   :  { %v2255_v12 = vpop.f32.mrb[31].mxu0 }
 0x131   :  { %v485_v13 = vadd.f32 %v2253_v7, %v120_v5  ;;  %v2256_v15 = vadd.f32 %v2255_v12, %v2254_v9  ;;  %2684 = vmatprep.mubr.bf16.mxu1 %v3460_v10  ;;  %v125_v5 = vld [vmem:[%s4128_s2 + $0x98] sm:$0xff] }
 0x133   :  { %v488_v16 = vadd.f32 %v2256_v15, %v121_v11  ;;  %v569_v21 = vmax.f32 %v485_v13, 0.0 }
 0x135   :  { %v570_v23 = vmax.f32 %v488_v16, 0.0  ;;  %v2257_v25 = vpop.f32.mrb[32].mxu0  ;;  %v126_v16 = vld [vmem:[%s4128_s2 + $0xa0] sm:$0xff] }
 0x136   :  { %v2258_v27 = vpop.f32.mrb[33].mxu0 }
 0x137   :  { %v2259_v28 = vadd.f32 %v2258_v27, %v2257_v25  ;;  %v2260_v32 = vpop.f32.mrb[34].mxu0  ;;  %v594_v34 = vpack.c.bf16 %v570_v23, %v569_v21  ;;  %v127_v27 = vld [vmem:[%s4128_s2 + $0xa8] sm:$0xff] }
 0x138   :  { %v2261_v53 = vpop.f32.mrb[35].mxu0 }
 0x139   :  { %v493_v54 = vadd.f32 %v2259_v28, %v122_v26  ;;  %v2262_v57 = vadd.f32 %v2261_v53, %v2260_v32  ;;  %2685 = vmatmul.mubr.bf16.gmra.mrb[32].mxu1 %v594_v34 }
 0x13b   :  { %v496_v58 = vadd.f32 %v2262_v57, %v123_v51  ;;  %v571_v59 = vmax.f32 %v493_v54, 0.0 }
 0x13d   :  { %v572_v60 = vmax.f32 %v496_v58, 0.0  ;;  %v2263_v61 = vpop.f32.mrb[36].mxu0 }
 0x13e   :  { %v2264_v0 = vpop.f32.mrb[37].mxu0 }
 0x13f   :  { %v2265_v1 = vadd.f32 %v2264_v0, %v2263_v61  ;;  %v2266_v3 = vpop.f32.mrb[38].mxu0  ;;  %v595_v4 = vpack.c.bf16 %v572_v60, %v571_v59 }
 0x140   :  { %v2267_v6 = vpop.f32.mrb[39].mxu0 }
 0x141   :  { %v501_v7 = vadd.f32 %v2265_v1, %v124_v63  ;;  %v2268_v9 = vadd.f32 %v2267_v6, %v2266_v3  ;;  %2688 = vmatprep.mubr.bf16.mxu1 %v595_v4 }
 0x143   :  { %v504_v11 = vadd.f32 %v2268_v9, %v125_v5  ;;  %v573_v12 = vmax.f32 %v501_v7, 0.0 }
 0x145   :  { %v574_v13 = vmax.f32 %v504_v11, 0.0  ;;  %v2269_v15 = vpop.f32.mrb[40].mxu0 }
 0x146   :  { %v2270_v21 = vpop.f32.mrb[41].mxu0 }
 0x147   :  { %v2271_v23 = vadd.f32 %v2270_v21, %v2269_v15  ;;  %v2272_v25 = vpop.f32.mrb[42].mxu0  ;;  %v596_v26 = vpack.c.bf16 %v574_v13, %v573_v12 }
 0x148   :  { %v2273_v28 = vpop.f32.mrb[43].mxu0 }
 0x149   :  { %v509_v32 = vadd.f32 %v2271_v23, %v126_v16  ;;  %v2274_v51 = vadd.f32 %v2273_v28, %v2272_v25  ;;  %2689 = vmatmul.mubr.bf16.gmra.mrb[36].mxu1 %v596_v26 }
 0x14b   :  { %v512_v53 = vadd.f32 %v2274_v51, %v127_v27  ;;  %v575_v54 = vmax.f32 %v509_v32, 0.0 }
 0x14d   :  { %v576_v57 = vmax.f32 %v512_v53, 0.0 }
 0x14f   :  { %v597_v58 = vpack.c.bf16 %v576_v57, %v575_v54 }
 0x151   :  { %2692 = vmatprep.mubr.bf16.mxu1 %v597_v58 }
 0x152   :  { %2693 = vmatmul.mubr.bf16.gmra.mrb[40].mxu1 %v3355_v36 }
 0x153   :  { %2696 = vmatprep.mubr.bf16.mxu1 %v3375_v14 }
 0x15a   :  { %2697 = vmatmul.mubr.bf16.gmra.mrb[44].mxu1 %v3399_v2 }
 0x15b   :  { %2700 = vmatprep.mubr.bf16.mxu1 %v3419_v55 }
 0x162   :  { %2701 = vmatmul.mubr.bf16.gmra.mrb[48].mxu1 %v3439_v19 }
 0x163   :  { %2720 = vmatprep.mubr.bf16.mxu1 %v3353_v30 }
 0x16a   :  { %2721 = vmatmul.mubr.bf16.vlgmr.msra.gmra.mrb[52].mxu1 %v3370_v8 }
 0x16b   :  { %2724 = vmatprep.mubr.bf16.mxu1 %v3394_v62 }
 0x172   :  { %2725 = vmatmul.mubr.bf16.gmra.mrb[56].mxu1 %v3417_v52 }
 0x173   :  { %2728 = vmatprep.mubr.bf16.mxu1 %v3437_v17 }
 0x17a   :  { %2729 = vmatmul.mubr.bf16.gmra.mrb[60].mxu1 %v3451_v56 }
 0x17b   :  { %2732 = vmatprep.mubr.bf16.mxu1 %v3460_v10 }
 0x182   :  { %2733 = vmatmul.mubr.bf16.gmra.mrb[64].mxu1 %v594_v34 }
 0x183   :  { %2736 = vmatprep.mubr.bf16.mxu1 %v595_v4 }
 0x18a   :  { %2737 = vmatmul.mubr.bf16.gmra.mrb[68].mxu1 %v596_v26 }
 0x18b   :  { %2740 = vmatprep.mubr.bf16.mxu1 %v597_v58 }
 0x192   :  { %2741 = vmatmul.mubr.bf16.gmra.mrb[72].mxu1 %v3355_v36 }
 0x193   :  { %2744 = vmatprep.mubr.bf16.mxu1 %v3375_v14 }
 0x19a   :  { %2745 = vmatmul.mubr.bf16.gmra.mrb[76].mxu1 %v3399_v2 }
 0x19b   :  { %2748 = vmatprep.mubr.bf16.mxu1 %v3419_v55 }
 0x1a2   :  { %2749 = vmatmul.mubr.bf16.gmra.mrb[80].mxu1 %v3439_v19 }
 0x1dc   :  { %v2674_v30 = vpop.f32.mrb[20].mxu1 }
 0x1dd   :  { %v701_v8 = vpop.f32.mrb[21].mxu1 }
 0x1de   :  { %v2675_v62 = vpop.f32.mrb[22].mxu1 }
 0x1df   :  { %v829_v52 = vpack.c.bf16 %v2675_v62, %v2674_v30  ;;  %v704_v17 = vpop.f32.mrb[23].mxu1 }
 0x1e0   :  { %v828_v56 = vpack.c.bf16 %v704_v17, %v701_v8 }
 0x1ec   :  { %v2678_v10 = vpop.f32.mrb[24].mxu1 }
 0x1ed   :  { %v717_v34 = vpop.f32.mrb[25].mxu1 }
 0x1ee   :  { %v2679_v59 = vpop.f32.mrb[26].mxu1 }
 0x1ef   :  { %v831_v60 = vpack.c.bf16 %v2679_v59, %v2678_v10  ;;  %v720_v61 = vpop.f32.mrb[27].mxu1  ;;  %v2966_v10 = vld [vmem:[%s4129_s6] sm:$0xff]   ;;  %v2967_v59 = vld [vmem:[%s4129_s6 + $0x8] sm:$0xff]  }
 0x1f0   :  { %v830_v36 = vpack.c.bf16 %v720_v61, %v717_v34  ;;  %2752 = vmatprep.subr.bf16.mxu1 %v2966_v10 }
 0x1f1   :  { %2753 = vmatpush3.bf16.msra.mxu1 %v2966_v10  ;;  %v3670_v10 = vld [vmem:[%s4125_s0 + $0xe4] ss:$8 sps:$4 sm:$0xff]  }
 0x1f2   :  { %2754 = vmatprep.subr.bf16.mxu1 %v2967_v59 }
 0x1f5   :  { %2755 = vmatpush3.bf16.msra.mxu1 %v2967_v59  ;;  %v3676_v59 = vld [vmem:[%s4125_s0 + $0xe0] ss:$8 sps:$4 sm:$0xff]  }
 0x1fc   :  { %v2682_v63 = vpop.f32.mrb[28].mxu1 }
 0x1fd   :  { %v733_v14 = vpop.f32.mrb[29].mxu1 }
 0x1fe   :  { %v2683_v0 = vpop.f32.mrb[30].mxu1 }
 0x1ff   :  { %v833_v2 = vpack.c.bf16 %v2683_v0, %v2682_v63  ;;  %v736_v1 = vpop.f32.mrb[31].mxu1  ;;  %v2968_v63 = vld [vmem:[%s4129_s6 + $0x10] sm:$0xff]  }
 0x200   :  { %v832_v55 = vpack.c.bf16 %v736_v1, %v733_v14  ;;  %2756 = vmatprep.subr.bf16.mxu1 %v2968_v63 }
 0x201   :  { %2757 = vmatpush3.bf16.msra.mxu1 %v2968_v63  ;;  %v3682_v63 = vld [vmem:[%s4125_s0 + $0xf4] ss:$8 sps:$4 sm:$0xff]  }
 0x20c   :  { %v2686_v3 = vpop.f32.mrb[32].mxu1 }
 0x20d   :  { %v749_v19 = vpop.f32.mrb[33].mxu1 }
 0x20e   :  { %v2687_v4 = vpop.f32.mrb[34].mxu1 }
 0x20f   :  { %v835_v5 = vpack.c.bf16 %v2687_v4, %v2686_v3  ;;  %v752_v6 = vpop.f32.mrb[35].mxu1 }
 0x210   :  { %v834_v7 = vpack.c.bf16 %v752_v6, %v749_v19 }
 0x21c   :  { %v2690_v9 = vpop.f32.mrb[36].mxu1 }
 0x21d   :  { %v765_v11 = vpop.f32.mrb[37].mxu1 }
 0x21e   :  { %v2691_v12 = vpop.f32.mrb[38].mxu1 }
 0x21f   :  { %v837_v13 = vpack.c.bf16 %v2691_v12, %v2690_v9  ;;  %v768_v15 = vpop.f32.mrb[39].mxu1 }
 0x220   :  { %v836_v16 = vpack.c.bf16 %v768_v15, %v765_v11 }
 0x222   :  { %2353 = vmatprep.subr.bf16.mxu0 %v836_v16 }
 0x223   :  { %2354 = vmatpush3.bf16.msra.mxu0 %v828_v56 }
 0x224   :  { %2355 = vmatprep.subr.bf16.mxu0 %v837_v13 }
 0x225   :  { %v2694_v21 = vpop.f32.mrb[40].mxu1 }
 0x226   :  { %v781_v23 = vpop.f32.mrb[41].mxu1 }
 0x227   :  { %v2695_v25 = vpop.f32.mrb[42].mxu1  ;;  %2356 = vmatpush3.bf16.msra.mxu0 %v829_v52 }
 0x228   :  { %v839_v26 = vpack.c.bf16 %v2695_v25, %v2694_v21  ;;  %v784_v27 = vpop.f32.mrb[43].mxu1 }
 0x229   :  { %v838_v28 = vpack.c.bf16 %v784_v27, %v781_v23 }
 0x22b   :  { %2357 = vmatprep.subr.bf16.mxu0 %v838_v28 }
 0x22c   :  { %2358 = vmatpush3.bf16.msra.mxu0 %v830_v36 }
 0x22d   :  { %v2698_v32 = vpop.f32.mrb[44].mxu1  ;;  %2359 = vmatprep.subr.bf16.mxu0 %v839_v26 }
 0x22e   :  { %v797_v51 = vpop.f32.mrb[45].mxu1 }
 0x22f   :  { %v2699_v53 = vpop.f32.mrb[46].mxu1 }
 0x230   :  { %v841_v54 = vpack.c.bf16 %v2699_v53, %v2698_v32  ;;  %v800_v57 = vpop.f32.mrb[47].mxu1  ;;  %2360 = vmatpush3.bf16.msra.mxu0 %v831_v60 }
 0x231   :  { %v840_v58 = vpack.c.bf16 %v800_v57, %v797_v51 }
 0x233   :  { %2361 = vmatprep.subr.bf16.mxu0 %v840_v58 }
 0x234   :  { %2362 = vmatpush3.bf16.msra.mxu0 %v832_v55 }
 0x235   :  { %v2702_v30 = vpop.f32.mrb[48].mxu1  ;;  %2363 = vmatprep.subr.bf16.mxu0 %v841_v54 }
 0x236   :  { %v813_v8 = vpop.f32.mrb[49].mxu1 }
 0x237   :  { %v2703_v62 = vpop.f32.mrb[50].mxu1 }
 0x238   :  { %v843_v52 = vpack.c.bf16 %v2703_v62, %v2702_v30  ;;  %v816_v17 = vpop.f32.mrb[51].mxu1  ;;  %2364 = vmatpush3.bf16.msra.mxu0 %v833_v2 }
 0x239   :  { %v842_v56 = vpack.c.bf16 %v816_v17, %v813_v8  ;;  %v2973_v17 = vld [vmem:[%s4129_s6 + $0x38] sm:$0xff]  }
 0x23b   :  { %2365 = vmatprep.subr.bf16.mxu0 %v842_v56  ;;  %v3664_v56 = vld [vmem:[%s4125_s0 + $0xd0] ss:$8 sps:$4 sm:$0xff]  }
 0x23c   :  { %2366 = vmatpush3.bf16.msra.mxu0 %v834_v7 }
 0x23d   :  { %v3504_v34 = vpop.f32.mrb[52].mxu1  ;;  %2367 = vmatprep.subr.bf16.mxu0 %v843_v52 }
 0x23e   :  { %v3509_v60 = vpop.f32.mrb[53].mxu1 }
 0x23f   :  { %v3511_v61 = vpop.f32.mrb[54].mxu1 }
 0x240   :  { %v3513_v36 = vpop.f32.mrb[55].mxu1  ;;  %2368 = vmatpush3.bf16.msra.mxu0 %v835_v5 }
 0x243   :  { %1109 = vmatmul.mubr.bf16.vlgmr.msra.gmra.mrb[44].mxu0 %v3151_v18 }
 0x244   :  { %1116 = vmatprep.mubr.bf16.mxu0 %v3159_v20 }
 0x245   :  { %v3520_v14 = vpop.f32.mrb[56].mxu1 }
 0x246   :  { %v3522_v0 = vpop.f32.mrb[57].mxu1 }
 0x247   :  { %v3524_v2 = vpop.f32.mrb[58].mxu1 }
 0x248   :  { %v3526_v1 = vpop.f32.mrb[59].mxu1 }
 0x24b   :  { %1117 = vmatmul.mubr.bf16.gmra.mrb[48].mxu0 %v3169_v22 }
 0x24c   :  { %1124 = vmatprep.mubr.bf16.mxu0 %v3177_v24  ;;  %v3553_v24 = vld [vmem:[%s4130_s5] ss:$0 sm:$0xff] }
 0x24d   :  { %v3530_v55 = vpop.f32.mrb[60].mxu1 }
 0x24e   :  { %v3532_v18 = vpop.f32.mrb[61].mxu1 }
 0x24f   :  { %v3534_v3 = vpop.f32.mrb[62].mxu1 }
 0x250   :  { %v3536_v20 = vpop.f32.mrb[63].mxu1 }
 0x253   :  { %1125 = vmatmul.mubr.bf16.gmra.mrb[52].mxu0 %v3196_v29 }
 0x254   :  { %1132 = vmatprep.mubr.bf16.mxu0 %v3204_v31 }
 0x255   :  { %v3540_v19 = vpop.f32.mrb[64].mxu1 }
 0x256   :  { %v3542_v4 = vpop.f32.mrb[65].mxu1 }
 0x257   :  { %v3544_v5 = vpop.f32.mrb[66].mxu1 }
 0x258   :  { %v3546_v22 = vpop.f32.mrb[67].mxu1 }
 0x25b   :  { %1133 = vmatmul.mubr.bf16.gmra.mrb[56].mxu0 %v3214_v33 }
 0x25c   :  { %1140 = vmatprep.mubr.bf16.mxu0 %v3222_v35 }
 0x25d   :  { %v2738_v29 = vpop.f32.mrb[68].mxu1 }
 0x25e   :  { %v3556_v31 = vadd.f32 %v2738_v29, %v3553_v24  ;;  %v1013_v6 = vpop.f32.mrb[69].mxu1  ;;  %v3001_v29 = vld [vmem:[%s4125_s0 + $0x4] ss:$8 sps:$4 sm:$0xff]  }
 0x25f   :  { %v3559_v7 = vadd.f32 %v3553_v24, %v1013_v6  ;;  %v2739_v9 = vpop.f32.mrb[70].mxu1  ;;  %v2974_v6 = vld [vmem:[%s4131_s7] sm:$0xff]  }
 0x260   :  { %v3562_v11 = vadd.f32 %v2739_v9, %v3553_v24  ;;  %v1016_v33 = vpop.f32.mrb[71].mxu1 }
 0x261   :  { %v3565_v35 = vadd.f32 %v3553_v24, %v1016_v33 }
 0x263   :  { %1141 = vmatmul.mubr.bf16.gmra.mrb[60].mxu0 %v3232_v37 }
 0x264   :  { %1148 = vmatprep.mubr.bf16.mxu0 %v3242_v39 }
 0x265   :  { %v2742_v12 = vpop.f32.mrb[72].mxu1 }
 0x266   :  { %v3570_v13 = vadd.f32 %v2742_v12, %v3553_v24  ;;  %v1029_v15 = vpop.f32.mrb[73].mxu1  ;;  %v950_v12 = vadd.f32 %v3553_v24, %v3509_v60 }
 0x267   :  { %v3573_v16 = vadd.f32 %v3553_v24, %v1029_v15  ;;  %v2743_v21 = vpop.f32.mrb[74].mxu1 }
 0x268   :  { %v3576_v23 = vadd.f32 %v2743_v21, %v3553_v24  ;;  %v1032_v25 = vpop.f32.mrb[75].mxu1 }
 0x269   :  { %v3579_v26 = vadd.f32 %v3553_v24, %v1032_v25 }
 0x26b   :  { %1149 = vmatmul.mubr.bf16.gmra.mrb[64].mxu0 %v3250_v40 }
 0x26c   :  { %1156 = vmatprep.mubr.bf16.mxu0 %v3255_v41 }
 0x26d   :  { %v2746_v37 = vpop.f32.mrb[76].mxu1 }
 0x26e   :  { %v3584_v39 = vadd.f32 %v2746_v37, %v3553_v24  ;;  %v1045_v27 = vpop.f32.mrb[77].mxu1 }
 0x26f   :  { %v3587_v28 = vadd.f32 %v3553_v24, %v1045_v27  ;;  %v2747_v32 = vpop.f32.mrb[78].mxu1 }
 0x270   :  { %v3590_v51 = vadd.f32 %v2747_v32, %v3553_v24  ;;  %v1048_v53 = vpop.f32.mrb[79].mxu1 }
 0x271   :  { %v3593_v54 = vadd.f32 %v3553_v24, %v1048_v53 }
 0x273   :  { %1157 = vmatmul.mubr.bf16.gmra.mrb[68].mxu0 %v3262_v42  ;;  %v3619_v42 = vld [vmem:[%s4125_s0 + $0xb4] ss:$8 sps:$4 sm:$0xff]  }
 0x274   :  { %1164 = vmatprep.mubr.bf16.mxu0 %v3267_v43  ;;  %v2969_v43 = vld [vmem:[%s4129_s6 + $0x18] sm:$0xff]  }
 0x275   :  { %v2750_v40 = vpop.f32.mrb[80].mxu1  ;;  %2758 = vmatprep.subr.bf16.mxu1 %v2969_v43 }
 0x276   :  { %v3598_v41 = vadd.f32 %v2750_v40, %v3553_v24  ;;  %v1061_v57 = vpop.f32.mrb[81].mxu1  ;;  %2759 = vmatpush3.bf16.msra.mxu1 %v2969_v43 }
 0x277   :  { %v3601_v58 = vadd.f32 %v3553_v24, %v1061_v57  ;;  %v2751_v30 = vpop.f32.mrb[82].mxu1 }
 0x278   :  { %v3604_v8 = vadd.f32 %v2751_v30, %v3553_v24  ;;  %v1064_v62 = vpop.f32.mrb[83].mxu1 }
 0x279   :  { %v3607_v52 = vadd.f32 %v3553_v24, %v1064_v62  ;;  %v958_v62 = vadd.f32 %v3504_v34, %v3553_v24  ;;  %v966_v34 = vadd.f32 %v3553_v24, %v3522_v0  ;;  %v2976_v0 = vld [vmem:[%s4131_s7 + $0x10] sm:$0xff]  }
 0x27b   :  { %1165 = vmatmul.mubr.bf16.gmra.mrb[72].mxu0 %v3274_v44  ;;  %v2970_v44 = vld [vmem:[%s4129_s6 + $0x20] sm:$0xff]  }
 0x27c   :  { %1172 = vmatprep.mubr.bf16.mxu0 %v3279_v45  ;;  %2760 = vmatprep.subr.bf16.mxu1 %v2970_v44  ;;  %v3631_v45 = vld [vmem:[%s4125_s0 + $0xb0] ss:$8 sps:$4 sm:$0xff]  }
 0x27d   :  { %2761 = vmatpush3.bf16.msra.mxu1 %v2970_v44 }
 0x283   :  { %1173 = vmatmul.mubr.bf16.gmra.mrb[76].mxu0 %v3286_v46  ;;  %v3637_v46 = vld [vmem:[%s4125_s0 + $0xc4] ss:$8 sps:$4 sm:$0xff]  }
 0x284   :  { %1180 = vmatprep.mubr.bf16.mxu0 %v3291_v47  ;;  %v2971_v47 = vld [vmem:[%s4129_s6 + $0x28] sm:$0xff]  }
 0x285   :  { %2762 = vmatprep.subr.bf16.mxu1 %v2971_v47 }
 0x286   :  { %2763 = vmatpush3.bf16.msra.mxu1 %v2971_v47 }
 0x28b   :  { %1181 = vmatmul.mubr.bf16.gmra.mrb[80].mxu0 %v3298_v48  ;;  %v2972_v48 = vld [vmem:[%s4129_s6 + $0x30] sm:$0xff]  }
 0x28c   :  { %1188 = vmatprep.mubr.bf16.mxu0 %v3303_v49  ;;  %2764 = vmatprep.subr.bf16.mxu1 %v2972_v48  ;;  %v3649_v49 = vld [vmem:[%s4125_s0 + $0xc0] ss:$8 sps:$4 sm:$0xff]  }
 0x28d   :  { %2765 = vmatpush3.bf16.msra.mxu1 %v2972_v48  ;;  %v961_v48 = vadd.f32 %v3511_v61, %v3553_v24  ;;  %v2975_v61 = vld [vmem:[%s4131_s7 + $0x8] sm:$0xff]  }
 0x28e   :  { %2766 = vmatprep.subr.bf16.mxu1 %v2973_v17 }
 0x291   :  { %2767 = vmatpush3.bf16.msra.mxu1 %v2973_v17 }
 0x292   :  { %2800 = vmatprep.subr.bf16.mxu1 %v2974_v6 }
 0x293   :  { %1189 = vmatmul.mubr.bf16.gmra.mrb[84].mxu0 %v3310_v50  ;;  %v3655_v50 = vld [vmem:[%s4125_s0 + $0xd4] ss:$8 sps:$4 sm:$0xff]  }
 0x294   :  { %1196 = vmatprep.mubr.bf16.mxu0 %v3619_v42 }
 0x29b   :  { %1197 = vmatmul.mubr.bf16.gmra.mrb[88].mxu0 %v3631_v45 }
 0x29c   :  { %1204 = vmatprep.mubr.bf16.mxu0 %v3637_v46 }
 0x2a3   :  { %1205 = vmatmul.mubr.bf16.gmra.mrb[92].mxu0 %v3649_v49 }
 0x2a4   :  { %1212 = vmatprep.mubr.bf16.mxu0 %v3655_v50 }
 0x2ab   :  { %1213 = vmatmul.mubr.bf16.gmra.mrb[96].mxu0 %v3664_v56 }
 0x2ac   :  { %1220 = vmatprep.mubr.bf16.mxu0 %v3670_v10 }
 0x2b3   :  { %1221 = vmatmul.mubr.bf16.gmra.mrb[100].mxu0 %v3676_v59 }
 0x2b4   :  { %1228 = vmatprep.mubr.bf16.mxu0 %v3682_v63 }
 0x2bb   :  { %1229 = vmatmul.mubr.bf16.gmra.mrb[104].mxu0 %v3237_v38  ;;  %v953_v38 = vadd.f32 %v3553_v24, %v3513_v36 }
 0x2bc   :  { %1790 = vmatprep.mubr.bf16.mxu0 %v3001_v29 }
 0x316   :  { %v2369_v9 = vpop.f32.mrb[44].mxu0 }
 0x317   :  { %v2370_v33 = vpop.f32.mrb[45].mxu0 }
 0x318   :  { %v2371_v15 = vadd.f32 %v2370_v33, %v2369_v9  ;;  %v2372_v21 = vpop.f32.mrb[46].mxu0 }
 0x319   :  { %v2373_v25 = vpop.f32.mrb[47].mxu0 }
 0x31a   :  { %v1111_v37 = vadd.f32 %v2371_v15, %v950_v12  ;;  %v2374_v27 = vadd.f32 %v2373_v25, %v2372_v21 }
 0x31c   :  { %v1114_v32 = vadd.f32 %v2374_v27, %v953_v38  ;;  %v1237_v53 = vmax.f32 %v1111_v37, 0.0  ;;  %v969_v27 = vadd.f32 %v3553_v24, %v3526_v1 }
 0x31e   :  { %v1238_v40 = vmax.f32 %v1114_v32, 0.0  ;;  %v2375_v57 = vpop.f32.mrb[48].mxu0 }
 0x31f   :  { %v2376_v30 = vpop.f32.mrb[49].mxu0 }
 0x320   :  { %v2377_v43 = vadd.f32 %v2376_v30, %v2375_v57  ;;  %v2378_v44 = vpop.f32.mrb[50].mxu0  ;;  %v3698_v47 = vpack.c.bf16 %v1238_v40, %v1237_v53 }
 0x321   :  { %v2379_v60 = vpop.f32.mrb[51].mxu0 }
 0x322   :  { %v1119_v17 = vadd.f32 %v2377_v43, %v958_v62  ;;  %v2380_v36 = vadd.f32 %v2379_v60, %v2378_v44  ;;  %2768 = vmatprep.mubr.bf16.mxu1 %v3698_v47  ;;  %v974_v44 = vadd.f32 %v3520_v14, %v3553_v24  ;;  %v2978_v14 = vld [vmem:[%s4131_s7 + $0x20] sm:$0xff]  }
 0x324   :  { %v1122_v29 = vadd.f32 %v2380_v36, %v961_v48  ;;  %v1239_v9 = vmax.f32 %v1119_v17, 0.0  ;;  %v977_v36 = vadd.f32 %v3524_v2, %v3553_v24 }
 0x326   :  { %v1240_v33 = vmax.f32 %v1122_v29, 0.0  ;;  %v2381_v12 = vpop.f32.mrb[52].mxu0 }
 0x327   :  { %v2382_v15 = vpop.f32.mrb[53].mxu0 }
 0x328   :  { %v3705_v21 = vpack.c.bf16 %v1240_v33, %v1239_v9  ;;  %v2383_v25 = vadd.f32 %v2382_v15, %v2381_v12  ;;  %v2384_v38 = vpop.f32.mrb[54].mxu0 }
 0x329   :  { %v2385_v37 = vpop.f32.mrb[55].mxu0 }
 0x32a   :  { %v1127_v32 = vadd.f32 %v2383_v25, %v966_v34  ;;  %v2386_v53 = vadd.f32 %v2385_v37, %v2384_v38  ;;  %2769 = vmatmul.mubr.bf16.vlgmr.msra.gmra.mrb[84].mxu1 %v3705_v21  ;;  %v982_v38 = vadd.f32 %v3553_v24, %v3532_v18  ;;  %v2980_v18 = vld [vmem:[%s4131_s7 + $0x30] sm:$0xff]  }
 0x32b   :  { %2801 = vmatpush3.bf16.msra.mxu1 %v2974_v6  ;;  %v2977_v6 = vld [vmem:[%s4131_s7 + $0x18] sm:$0xff]  }
 0x32c   :  { %v1130_v40 = vadd.f32 %v2386_v53, %v969_v27  ;;  %2802 = vmatprep.subr.bf16.mxu1 %v2975_v61  ;;  %v1241_v57 = vmax.f32 %v1127_v32, 0.0  ;;  %v2979_v27 = vld [vmem:[%s4131_s7 + $0x28] sm:$0xff]   ;;  %v985_v53 = vadd.f32 %v3553_v24, %v3536_v20 }
 0x32e   :  { %v1242_v30 = vmax.f32 %v1130_v40, 0.0  ;;  %v2387_v62 = vpop.f32.mrb[56].mxu0 }
 0x32f   :  { %v2388_v43 = vpop.f32.mrb[57].mxu0  ;;  %2803 = vmatpush3.bf16.msra.mxu1 %v2975_v61 }
 0x330   :  { %v2389_v1 = vadd.f32 %v2388_v43, %v2387_v62  ;;  %v2390_v60 = vpop.f32.mrb[58].mxu0  ;;  %v3718_v48 = vpack.c.bf16 %v1242_v30, %v1241_v57  ;;  %2804 = vmatprep.subr.bf16.mxu1 %v2976_v0 }
 0x331   :  { %v2391_v17 = vpop.f32.mrb[59].mxu0 }
 0x332   :  { %v1135_v29 = vadd.f32 %v2389_v1, %v974_v44  ;;  %v2392_v9 = vadd.f32 %v2391_v17, %v2390_v60  ;;  %2772 = vmatprep.mubr.bf16.mxu1 %v3718_v48  ;;  %v990_v1 = vadd.f32 %v3530_v55, %v3553_v24  ;;  %v2981_v17 = vld [vmem:[%s4131_s7 + $0x38] sm:$0xff]  }
 0x333   :  { %2805 = vmatpush3.bf16.msra.mxu1 %v2976_v0 }
 0x334   :  { %v1138_v33 = vadd.f32 %v2392_v9, %v977_v36  ;;  %2806 = vmatprep.subr.bf16.mxu1 %v2977_v6  ;;  %v1243_v12 = vmax.f32 %v1135_v29, 0.0  ;;  %v993_v29 = vadd.f32 %v3534_v3, %v3553_v24 }
 0x336   :  { %v1244_v15 = vmax.f32 %v1138_v33, 0.0  ;;  %v2393_v34 = vpop.f32.mrb[60].mxu0 }
 0x337   :  { %v2394_v25 = vpop.f32.mrb[61].mxu0  ;;  %2807 = vmatpush3.bf16.msra.mxu1 %v2977_v6 }
 0x338   :  { %v2395_v2 = vadd.f32 %v2394_v25, %v2393_v34  ;;  %v2396_v61 = vpop.f32.mrb[62].mxu0  ;;  %v3731_v37 = vpack.c.bf16 %v1244_v15, %v1243_v12  ;;  %2808 = vmatprep.subr.bf16.mxu1 %v2978_v14  ;;  %v998_v25 = vadd.f32 %v3553_v24, %v3542_v4  ;;  %v1006_v4 = vadd.f32 %v3540_v19, %v3553_v24 }
 0x339   :  { %v2397_v32 = vpop.f32.mrb[63].mxu0 }
 0x33a   :  { %v1143_v40 = vadd.f32 %v2395_v2, %v982_v38  ;;  %v2398_v0 = vadd.f32 %v2397_v32, %v2396_v61  ;;  %2773 = vmatmul.mubr.bf16.gmra.mrb[88].mxu1 %v3731_v37 }
 0x33b   :  { %2809 = vmatpush3.bf16.msra.mxu1 %v2978_v14 }
 0x33c   :  { %v1146_v57 = vadd.f32 %v2398_v0, %v985_v53  ;;  %2810 = vmatprep.subr.bf16.mxu1 %v2979_v27  ;;  %v1245_v30 = vmax.f32 %v1143_v40, 0.0 }
 0x33e   :  { %v1246_v62 = vmax.f32 %v1146_v57, 0.0  ;;  %v2399_v43 = vpop.f32.mrb[64].mxu0 }
 0x33f   :  { %v2400_v44 = vpop.f32.mrb[65].mxu0  ;;  %2811 = vmatpush3.bf16.msra.mxu1 %v2979_v27  ;;  %v1001_v27 = vadd.f32 %v3553_v24, %v3546_v22  ;;  %v1009_v22 = vadd.f32 %v3544_v5, %v3553_v24 }
 0x340   :  { %v2401_v20 = vadd.f32 %v2400_v44, %v2399_v43  ;;  %v2402_v60 = vpop.f32.mrb[66].mxu0  ;;  %v3744_v6 = vpack.c.bf16 %v1246_v62, %v1245_v30  ;;  %2812 = vmatprep.subr.bf16.mxu1 %v2980_v18 }
 0x341   :  { %v2403_v36 = vpop.f32.mrb[67].mxu0 }
 0x342   :  { %v1151_v9 = vadd.f32 %v2401_v20, %v990_v1  ;;  %v2404_v33 = vadd.f32 %v2403_v36, %v2402_v60  ;;  %2776 = vmatprep.mubr.bf16.mxu1 %v3744_v6 }
 0x343   :  { %2813 = vmatpush3.bf16.msra.mxu1 %v2980_v18 }
 0x344   :  { %v1154_v14 = vadd.f32 %v2404_v33, %v993_v29  ;;  %2814 = vmatprep.subr.bf16.mxu1 %v2981_v17  ;;  %v1247_v55 = vmax.f32 %v1151_v9, 0.0 }
 0x346   :  { %v1248_v12 = vmax.f32 %v1154_v14, 0.0  ;;  %v2405_v15 = vpop.f32.mrb[68].mxu0 }
 0x347   :  { %v2406_v34 = vpop.f32.mrb[69].mxu0  ;;  %2815 = vmatpush3.bf16.msra.mxu1 %v2981_v17 }
 0x348   :  { %v2407_v38 = vadd.f32 %v2406_v34, %v2405_v15  ;;  %v2408_v2 = vpop.f32.mrb[70].mxu0  ;;  %v3754_v61 = vpack.c.bf16 %v1248_v12, %v1247_v55 }
 0x349   :  { %v2409_v3 = vpop.f32.mrb[71].mxu0 }
 0x34a   :  { %v1159_v32 = vadd.f32 %v2407_v38, %v998_v25  ;;  %v2410_v53 = vadd.f32 %v2409_v3, %v2408_v2  ;;  %2777 = vmatmul.mubr.bf16.gmra.mrb[92].mxu1 %v3754_v61 }
 0x34c   :  { %v1162_v40 = vadd.f32 %v2410_v53, %v1001_v27  ;;  %v1249_v0 = vmax.f32 %v1159_v32, 0.0 }
 0x34e   :  { %v1250_v57 = vmax.f32 %v1162_v40, 0.0  ;;  %v2411_v18 = vpop.f32.mrb[72].mxu0 }
 0x34f   :  { %v2412_v30 = vpop.f32.mrb[73].mxu0 }
 0x350   :  { %v2413_v62 = vadd.f32 %v2412_v30, %v2411_v18  ;;  %v2414_v43 = vpop.f32.mrb[74].mxu0  ;;  %v3761_v44 = vpack.c.bf16 %v1250_v57, %v1249_v0 }
 0x351   :  { %v2415_v1 = vpop.f32.mrb[75].mxu0 }
 0x352   :  { %v1167_v20 = vadd.f32 %v2413_v62, %v1006_v4  ;;  %v2416_v60 = vadd.f32 %v2415_v1, %v2414_v43  ;;  %2780 = vmatprep.mubr.bf16.mxu1 %v3761_v44 }
 0x354   :  { %v1170_v17 = vadd.f32 %v2416_v60, %v1009_v22  ;;  %v1251_v36 = vmax.f32 %v1167_v20, 0.0 }
 0x356   :  { %v1252_v29 = vmax.f32 %v1170_v17, 0.0  ;;  %v2417_v9 = vpop.f32.mrb[76].mxu0 }
 0x357   :  { %v2418_v33 = vpop.f32.mrb[77].mxu0 }
 0x358   :  { %v2419_v14 = vadd.f32 %v2418_v33, %v2417_v9  ;;  %v2420_v55 = vpop.f32.mrb[78].mxu0  ;;  %v3766_v19 = vpack.c.bf16 %v1252_v29, %v1251_v36 }
 0x359   :  { %v2421_v12 = vpop.f32.mrb[79].mxu0 }
 0x35a   :  { %v1175_v15 = vadd.f32 %v2419_v14, %v3559_v7  ;;  %v2422_v34 = vadd.f32 %v2421_v12, %v2420_v55  ;;  %2781 = vmatmul.mubr.bf16.gmra.mrb[96].mxu1 %v3766_v19 }
 0x35c   :  { %v1178_v5 = vadd.f32 %v2422_v34, %v3565_v35  ;;  %v1253_v24 = vmax.f32 %v1175_v15, 0.0 }
 0x35e   :  { %v1254_v25 = vmax.f32 %v1178_v5, 0.0  ;;  %v2423_v38 = vpop.f32.mrb[80].mxu0 }
 0x35f   :  { %v2424_v2 = vpop.f32.mrb[81].mxu0 }
 0x360   :  { %v2425_v3 = vadd.f32 %v2424_v2, %v2423_v38  ;;  %v2426_v27 = vpop.f32.mrb[82].mxu0  ;;  %v3771_v32 = vpack.c.bf16 %v1254_v25, %v1253_v24 }
 0x361   :  { %v2427_v53 = vpop.f32.mrb[83].mxu0 }
 0x362   :  { %v1183_v40 = vadd.f32 %v2425_v3, %v3556_v31  ;;  %v2428_v0 = vadd.f32 %v2427_v53, %v2426_v27  ;;  %2784 = vmatprep.mubr.bf16.mxu1 %v3771_v32 }
 0x364   :  { %v1186_v7 = vadd.f32 %v2428_v0, %v3562_v11  ;;  %v1255_v57 = vmax.f32 %v1183_v40, 0.0 }
 0x366   :  { %v1256_v18 = vmax.f32 %v1186_v7, 0.0  ;;  %v2429_v30 = vpop.f32.mrb[84].mxu0 }
 0x367   :  { %v2430_v35 = vpop.f32.mrb[85].mxu0 }
 0x368   :  { %v2431_v4 = vadd.f32 %v2430_v35, %v2429_v30  ;;  %v2432_v62 = vpop.f32.mrb[86].mxu0  ;;  %v3776_v43 = vpack.c.bf16 %v1256_v18, %v1255_v57 }
 0x369   :  { %v2433_v1 = vpop.f32.mrb[87].mxu0 }
 0x36a   :  { %v1191_v22 = vadd.f32 %v2431_v4, %v3573_v16  ;;  %v2434_v20 = vadd.f32 %v2433_v1, %v2432_v62  ;;  %2785 = vmatmul.mubr.bf16.gmra.mrb[100].mxu1 %v3776_v43 }
 0x36c   :  { %v1194_v31 = vadd.f32 %v2434_v20, %v3579_v26  ;;  %v1257_v60 = vmax.f32 %v1191_v22, 0.0 }
 0x36e   :  { %v1258_v17 = vmax.f32 %v1194_v31, 0.0  ;;  %v2435_v36 = vpop.f32.mrb[88].mxu0 }
 0x36f   :  { %v2436_v11 = vpop.f32.mrb[89].mxu0 }
 0x370   :  { %v2437_v29 = vadd.f32 %v2436_v11, %v2435_v36  ;;  %v2438_v9 = vpop.f32.mrb[90].mxu0  ;;  %v3781_v33 = vpack.c.bf16 %v1258_v17, %v1257_v60 }
 0x371   :  { %v2439_v14 = vpop.f32.mrb[91].mxu0 }
 0x372   :  { %v1199_v55 = vadd.f32 %v2437_v29, %v3570_v13  ;;  %v2440_v12 = vadd.f32 %v2439_v14, %v2438_v9  ;;  %2788 = vmatprep.mubr.bf16.mxu1 %v3781_v33 }
 0x374   :  { %v1202_v16 = vadd.f32 %v2440_v12, %v3576_v23  ;;  %v1259_v15 = vmax.f32 %v1199_v55, 0.0 }
 0x376   :  { %v1260_v34 = vmax.f32 %v1202_v16, 0.0  ;;  %v2441_v5 = vpop.f32.mrb[92].mxu0 }
 0x377   :  { %v2442_v26 = vpop.f32.mrb[93].mxu0 }
 0x378   :  { %v2443_v24 = vadd.f32 %v2442_v26, %v2441_v5  ;;  %v2444_v25 = vpop.f32.mrb[94].mxu0  ;;  %v1280_v38 = vpack.c.bf16 %v1260_v34, %v1259_v15 }
 0x379   :  { %v2445_v2 = vpop.f32.mrb[95].mxu0 }
 0x37a   :  { %v1207_v3 = vadd.f32 %v2443_v24, %v3587_v28  ;;  %v2446_v27 = vadd.f32 %v2445_v2, %v2444_v25  ;;  %2789 = vmatmul.mubr.bf16.gmra.mrb[104].mxu1 %v1280_v38 }
 0x37c   :  { %v1210_v53 = vadd.f32 %v2446_v27, %v3593_v54  ;;  %v1261_v13 = vmax.f32 %v1207_v3, 0.0 }
 0x37e   :  { %v1262_v40 = vmax.f32 %v1210_v53, 0.0  ;;  %v2447_v0 = vpop.f32.mrb[96].mxu0 }
 0x37f   :  { %v2448_v7 = vpop.f32.mrb[97].mxu0 }
 0x380   :  { %v2449_v57 = vadd.f32 %v2448_v7, %v2447_v0  ;;  %v2450_v23 = vpop.f32.mrb[98].mxu0  ;;  %v1281_v18 = vpack.c.bf16 %v1262_v40, %v1261_v13 }
 0x381   :  { %v2451_v30 = vpop.f32.mrb[99].mxu0 }
 0x382   :  { %v1215_v35 = vadd.f32 %v2449_v57, %v3584_v39  ;;  %v2452_v4 = vadd.f32 %v2451_v30, %v2450_v23  ;;  %2792 = vmatprep.mubr.bf16.mxu1 %v1281_v18 }
 0x384   :  { %v1218_v62 = vadd.f32 %v2452_v4, %v3590_v51  ;;  %v1263_v1 = vmax.f32 %v1215_v35, 0.0 }
 0x386   :  { %v1264_v28 = vmax.f32 %v1218_v62, 0.0  ;;  %v2453_v22 = vpop.f32.mrb[100].mxu0 }
 0x387   :  { %v2454_v20 = vpop.f32.mrb[101].mxu0 }
 0x388   :  { %v2455_v31 = vadd.f32 %v2454_v20, %v2453_v22  ;;  %v2456_v54 = vpop.f32.mrb[102].mxu0  ;;  %v1282_v60 = vpack.c.bf16 %v1264_v28, %v1263_v1 }
 0x389   :  { %v2457_v17 = vpop.f32.mrb[103].mxu0 }
 0x38a   :  { %v1223_v36 = vadd.f32 %v2455_v31, %v3601_v58  ;;  %v2458_v11 = vadd.f32 %v2457_v17, %v2456_v54  ;;  %2793 = vmatmul.mubr.bf16.gmra.mrb[108].mxu1 %v1282_v60 }
 0x38c   :  { %v1226_v29 = vadd.f32 %v2458_v11, %v3607_v52  ;;  %v1265_v9 = vmax.f32 %v1223_v36, 0.0 }
 0x38e   :  { %v1266_v39 = vmax.f32 %v1226_v29, 0.0  ;;  %v2459_v14 = vpop.f32.mrb[104].mxu0 }
 0x38f   :  { %v2460_v55 = vpop.f32.mrb[105].mxu0 }
 0x390   :  { %v2461_v12 = vadd.f32 %v2460_v55, %v2459_v14  ;;  %v2462_v51 = vpop.f32.mrb[106].mxu0  ;;  %v1283_v16 = vpack.c.bf16 %v1266_v39, %v1265_v9 }
 0x391   :  { %v2463_v15 = vpop.f32.mrb[107].mxu0 }
 0x392   :  { %v1231_v34 = vadd.f32 %v2461_v12, %v3598_v41  ;;  %v2464_v5 = vadd.f32 %v2463_v15, %v2462_v51  ;;  %2796 = vmatprep.mubr.bf16.mxu1 %v1283_v16 }
 0x394   :  { %v1234_v26 = vadd.f32 %v2464_v5, %v3604_v8  ;;  %v1267_v24 = vmax.f32 %v1231_v34, 0.0 }
 0x396   :  { %v1268_v58 = vmax.f32 %v1234_v26, 0.0 }
 0x398   :  { %v1284_v25 = vpack.c.bf16 %v1268_v58, %v1267_v24  ;;  %v3002_v24 = vld [vmem:[%s4125_s0] ss:$8 sps:$4 sm:$0xff]   ;;  %v3003_v58 = vld [vmem:[%s4125_s0 + $0x14] ss:$8 sps:$4 sm:$0xff]  }
 0x39a   :  { %2797 = vmatmul.mubr.bf16.gmra.mrb[112].mxu1 %v1284_v25 }
 0x39b   :  { %2816 = vmatprep.mubr.bf16.mxu1 %v3698_v47 }
 0x3a2   :  { %2817 = vmatmul.mubr.bf16.vlgmr.msra.gmra.mrb[116].mxu1 %v3705_v21 }
 0x3a3   :  { %2820 = vmatprep.mubr.bf16.mxu1 %v3718_v48 }
 0x3aa   :  { %2821 = vmatmul.mubr.bf16.gmra.mrb[120].mxu1 %v3731_v37 }
 0x3ab   :  { %2824 = vmatprep.mubr.bf16.mxu1 %v3744_v6 }
 0x3b2   :  { %2825 = vmatmul.mubr.bf16.gmra.mrb[124].mxu1 %v3754_v61 }
 0x3b3   :  { %2828 = vmatprep.mubr.bf16.mxu1 %v3761_v44 }
 0x3ba   :  { %2829 = vmatmul.mubr.bf16.gmra.mrb[128].mxu1 %v3766_v19 }
 0x3bb   :  { %2832 = vmatprep.mubr.bf16.mxu1 %v3771_v32 }
 0x3c2   :  { %2833 = vmatmul.mubr.bf16.gmra.mrb[132].mxu1 %v3776_v43 }
 0x3c3   :  { %2836 = vmatprep.mubr.bf16.mxu1 %v3781_v33 }
 0x3ca   :  { %2837 = vmatmul.mubr.bf16.gmra.mrb[136].mxu1 %v1280_v38 }
 0x3cb   :  { %2840 = vmatprep.mubr.bf16.mxu1 %v1281_v18 }
 0x3d2   :  { %2841 = vmatmul.mubr.bf16.gmra.mrb[140].mxu1 %v1282_v60 }
 0x3d3   :  { %2844 = vmatprep.mubr.bf16.mxu1 %v1283_v16 }
 0x3da   :  { %2845 = vmatmul.mubr.bf16.gmra.mrb[144].mxu1 %v1284_v25 }
 0x3fd   :  { %v2770_v41 = vpop.f32.mrb[84].mxu1 }
 0x3fe   :  { %v1383_v8 = vpop.f32.mrb[85].mxu1 }
 0x3ff   :  { %v2771_v52 = vpop.f32.mrb[86].mxu1 }
 0x400   :  { %v1511_v47 = vpack.c.bf16 %v2771_v52, %v2770_v41  ;;  %v1386_v21 = vpop.f32.mrb[87].mxu1 }
 0x401   :  { %v1510_v48 = vpack.c.bf16 %v1386_v21, %v1383_v8  ;;  %v3005_v21 = vld [vmem:[%s4125_s0 + $0x24] ss:$8 sps:$4 sm:$0xff]  }
 0x40d   :  { %v2774_v37 = vpop.f32.mrb[88].mxu1 }
 0x40e   :  { %v1399_v6 = vpop.f32.mrb[89].mxu1 }
 0x40f   :  { %v2775_v61 = vpop.f32.mrb[90].mxu1 }
 0x410   :  { %v1513_v44 = vpack.c.bf16 %v2775_v61, %v2774_v37  ;;  %v1402_v19 = vpop.f32.mrb[91].mxu1 }
 0x411   :  { %v1512_v32 = vpack.c.bf16 %v1402_v19, %v1399_v6  ;;  %v3007_v19 = vld [vmem:[%s4125_s0 + $0x34] ss:$8 sps:$4 sm:$0xff]  }
 0x41d   :  { %v2778_v43 = vpop.f32.mrb[92].mxu1 }
 0x41e   :  { %v1415_v2 = vpop.f32.mrb[93].mxu1 }
 0x41f   :  { %v2779_v33 = vpop.f32.mrb[94].mxu1 }
 0x420   :  { %v1515_v38 = vpack.c.bf16 %v2779_v33, %v2778_v43  ;;  %v1418_v3 = vpop.f32.mrb[95].mxu1 }
 0x421   :  { %v1514_v27 = vpack.c.bf16 %v1418_v3, %v1415_v2  ;;  %v3009_v3 = vld [vmem:[%s4125_s0 + $0x44] ss:$8 sps:$4 sm:$0xff]  }
 0x42d   :  { %v2782_v53 = vpop.f32.mrb[96].mxu1 }
 0x42e   :  { %v1431_v13 = vpop.f32.mrb[97].mxu1 }
 0x42f   :  { %v2783_v40 = vpop.f32.mrb[98].mxu1 }
 0x430   :  { %v1517_v0 = vpack.c.bf16 %v2783_v40, %v2782_v53  ;;  %v1434_v7 = vpop.f32.mrb[99].mxu1 }
 0x431   :  { %v1516_v57 = vpack.c.bf16 %v1434_v7, %v1431_v13  ;;  %v3011_v7 = vld [vmem:[%s4125_s0 + $0x54] ss:$8 sps:$4 sm:$0xff]  }
 0x43d   :  { %v2786_v23 = vpop.f32.mrb[100].mxu1 }
 0x43e   :  { %v1447_v18 = vpop.f32.mrb[101].mxu1 }
 0x43f   :  { %v2787_v30 = vpop.f32.mrb[102].mxu1 }
 0x440   :  { %v1519_v35 = vpack.c.bf16 %v2787_v30, %v2786_v23  ;;  %v1450_v4 = vpop.f32.mrb[103].mxu1 }
 0x441   :  { %v1518_v62 = vpack.c.bf16 %v1450_v4, %v1447_v18  ;;  %v3013_v4 = vld [vmem:[%s4125_s0 + $0x64] ss:$8 sps:$4 sm:$0xff]  }
 0x443   :  { %2513 = vmatprep.subr.bf16.mxu0 %v1518_v62 }
 0x444   :  { %2514 = vmatpush3.bf16.msra.mxu0 %v1510_v48 }
 0x445   :  { %2515 = vmatprep.subr.bf16.mxu0 %v1519_v35  ;;  %v3012_v35 = vld [vmem:[%s4125_s0 + $0x50] ss:$8 sps:$4 sm:$0xff]  }
 0x448   :  { %2516 = vmatpush3.bf16.msra.mxu0 %v1511_v47  ;;  %v3004_v47 = vld [vmem:[%s4125_s0 + $0x10] ss:$8 sps:$4 sm:$0xff]  }
 0x44d   :  { %v2790_v1 = vpop.f32.mrb[104].mxu1 }
 0x44e   :  { %v1463_v28 = vpop.f32.mrb[105].mxu1 }
 0x44f   :  { %v2791_v22 = vpop.f32.mrb[106].mxu1 }
 0x450   :  { %v1521_v20 = vpack.c.bf16 %v2791_v22, %v2790_v1  ;;  %v1466_v31 = vpop.f32.mrb[107].mxu1 }
 0x451   :  { %v1520_v54 = vpack.c.bf16 %v1466_v31, %v1463_v28  ;;  %v3015_v31 = vld [vmem:[%s4125_s0 + $0x74] ss:$8 sps:$4 sm:$0xff]  }
 0x453   :  { %2517 = vmatprep.subr.bf16.mxu0 %v1520_v54 }
 0x454   :  { %2518 = vmatpush3.bf16.msra.mxu0 %v1512_v32 }
 0x455   :  { %2519 = vmatprep.subr.bf16.mxu0 %v1521_v20  ;;  %v3014_v20 = vld [vmem:[%s4125_s0 + $0x60] ss:$8 sps:$4 sm:$0xff]  }
 0x458   :  { %2520 = vmatpush3.bf16.msra.mxu0 %v1513_v44  ;;  %v3006_v44 = vld [vmem:[%s4125_s0 + $0x20] ss:$8 sps:$4 sm:$0xff]  }
 0x45d   :  { %v2794_v60 = vpop.f32.mrb[108].mxu1 }
 0x45e   :  { %v1479_v17 = vpop.f32.mrb[109].mxu1 }
 0x45f   :  { %v2795_v36 = vpop.f32.mrb[110].mxu1 }
 0x460   :  { %v1523_v11 = vpack.c.bf16 %v2795_v36, %v2794_v60  ;;  %v1482_v29 = vpop.f32.mrb[111].mxu1 }
 0x461   :  { %v1522_v9 = vpack.c.bf16 %v1482_v29, %v1479_v17  ;;  %v3017_v29 = vld [vmem:[%s4125_s0 + $0x84] ss:$8 sps:$4 sm:$0xff]  }
 0x463   :  { %2521 = vmatprep.subr.bf16.mxu0 %v1522_v9  ;;  %v3018_v9 = vld [vmem:[%s4125_s0 + $0x80] ss:$8 sps:$4 sm:$0xff]  }
 0x464   :  { %2522 = vmatpush3.bf16.msra.mxu0 %v1514_v27 }
 0x465   :  { %2523 = vmatprep.subr.bf16.mxu0 %v1523_v11  ;;  %v3016_v11 = vld [vmem:[%s4125_s0 + $0x70] ss:$8 sps:$4 sm:$0xff]  }
 0x468   :  { %2524 = vmatpush3.bf16.msra.mxu0 %v1515_v38  ;;  %v3008_v38 = vld [vmem:[%s4125_s0 + $0x30] ss:$8 sps:$4 sm:$0xff]  }
 0x46d   :  { %v2798_v39 = vpop.f32.mrb[112].mxu1 }
 0x46e   :  { %v1495_v14 = vpop.f32.mrb[113].mxu1 }
 0x46f   :  { %v2799_v55 = vpop.f32.mrb[114].mxu1 }
 0x470   :  { %v1525_v12 = vpack.c.bf16 %v2799_v55, %v2798_v39  ;;  %v1498_v51 = vpop.f32.mrb[115].mxu1  ;;  %v3019_v39 = vld [vmem:[%s4125_s0 + $0x94] ss:$8 sps:$4 sm:$0xff]   ;;  %v3021_v55 = vld [vmem:[%s4125_s0 + $0xa4] ss:$8 sps:$4 sm:$0xff]  }
 0x471   :  { %v1524_v16 = vpack.c.bf16 %v1498_v51, %v1495_v14  ;;  %v3020_v14 = vld [vmem:[%s4125_s0 + $0x90] ss:$8 sps:$4 sm:$0xff]  }
 0x473   :  { %2525 = vmatprep.subr.bf16.mxu0 %v1524_v16 }
 0x474   :  { %2526 = vmatpush3.bf16.msra.mxu0 %v1516_v57 }
 0x475   :  { %v3805_v15 = vpop.f32.mrb[116].mxu1  ;;  %2527 = vmatprep.subr.bf16.mxu0 %v1525_v12  ;;  %v3022_v12 = vld [vmem:[%s4125_s0 + $0xa0] ss:$8 sps:$4 sm:$0xff]  }
 0x476   :  { %v3807_v34 = vpop.f32.mrb[117].mxu1 }
 0x477   :  { %v3809_v5 = vpop.f32.mrb[118].mxu1 }
 0x478   :  { %v3811_v26 = vpop.f32.mrb[119].mxu1  ;;  %2528 = vmatpush3.bf16.msra.mxu0 %v1517_v0  ;;  %v3010_v0 = vld [vmem:[%s4125_s0 + $0x40] ss:$8 sps:$4 sm:$0xff]  }
 0x47b   :  { %1791 = vmatmul.mubr.bf16.vlgmr.msra.gmra.mrb[108].mxu0 %v3002_v24 }
 0x47c   :  { %1798 = vmatprep.mubr.bf16.mxu0 %v3003_v58 }
 0x47d   :  { %v3819_v25 = vpop.f32.mrb[120].mxu1 }
 0x47e   :  { %v3821_v41 = vpop.f32.mrb[121].mxu1 }
 0x47f   :  { %v3823_v8 = vpop.f32.mrb[122].mxu1 }
 0x480   :  { %v3825_v52 = vpop.f32.mrb[123].mxu1 }
 0x483   :  { %1799 = vmatmul.mubr.bf16.gmra.mrb[112].mxu0 %v3004_v47 }
 0x484   :  { %1806 = vmatprep.mubr.bf16.mxu0 %v3005_v21 }
 0x485   :  { %v3833_v48 = vpop.f32.mrb[124].mxu1 }
 0x486   :  { %v3835_v37 = vpop.f32.mrb[125].mxu1 }
 0x487   :  { %v3837_v6 = vpop.f32.mrb[126].mxu1 }
 0x488   :  { %v3839_v61 = vpop.f32.mrb[127].mxu1 }
 0x48b   :  { %1807 = vmatmul.mubr.bf16.gmra.mrb[116].mxu0 %v3006_v44 }
 0x48c   :  { %1814 = vmatprep.mubr.bf16.mxu0 %v3007_v19 }
 0x48d   :  { %v3847_v32 = vpop.f32.mrb[128].mxu1 }
 0x48e   :  { %v3849_v43 = vpop.f32.mrb[129].mxu1 }
 0x48f   :  { %v3851_v2 = vpop.f32.mrb[130].mxu1 }
 0x490   :  { %v3853_v33 = vpop.f32.mrb[131].mxu1 }
 0x493   :  { %1815 = vmatmul.mubr.bf16.gmra.mrb[120].mxu0 %v3008_v38 }
 0x494   :  { %1822 = vmatprep.mubr.bf16.mxu0 %v3009_v3 }
 0x495   :  { %v3861_v27 = vpop.f32.mrb[132].mxu1 }
 0x496   :  { %v3863_v53 = vpop.f32.mrb[133].mxu1 }
 0x497   :  { %v3865_v13 = vpop.f32.mrb[134].mxu1 }
 0x498   :  { %v3867_v40 = vpop.f32.mrb[135].mxu1 }
 0x49b   :  { %1823 = vmatmul.mubr.bf16.gmra.mrb[124].mxu0 %v3010_v0 }
 0x49c   :  { %1830 = vmatprep.mubr.bf16.mxu0 %v3011_v7 }
 0x49d   :  { %v3875_v57 = vpop.f32.mrb[136].mxu1 }
 0x49e   :  { %v3877_v23 = vpop.f32.mrb[137].mxu1 }
 0x49f   :  { %v3879_v18 = vpop.f32.mrb[138].mxu1 }
 0x4a0   :  { %v3881_v30 = vpop.f32.mrb[139].mxu1 }
 0x4a3   :  { %1831 = vmatmul.mubr.bf16.gmra.mrb[128].mxu0 %v3012_v35 }
 0x4a4   :  { %1838 = vmatprep.mubr.bf16.mxu0 %v3013_v4 }
 0x4a5   :  { %v3889_v62 = vpop.f32.mrb[140].mxu1 }
 0x4a6   :  { %v3891_v1 = vpop.f32.mrb[141].mxu1 }
 0x4a7   :  { %v3893_v28 = vpop.f32.mrb[142].mxu1 }
 0x4a8   :  { %v3895_v22 = vpop.f32.mrb[143].mxu1 }
 0x4ab   :  { %1839 = vmatmul.mubr.bf16.gmra.mrb[132].mxu0 %v3014_v20 }
 0x4ac   :  { %1846 = vmatprep.mubr.bf16.mxu0 %v3015_v31 }
 0x4ad   :  { %v3903_v54 = vpop.f32.mrb[144].mxu1 }
 0x4ae   :  { %v3905_v60 = vpop.f32.mrb[145].mxu1 }
 0x4af   :  { %v3907_v17 = vpop.f32.mrb[146].mxu1 }
 0x4b0   :  { %v3909_v36 = vpop.f32.mrb[147].mxu1 }
 0x4b3   :  { %1847 = vmatmul.mubr.bf16.gmra.mrb[136].mxu0 %v3016_v11 }
 0x4b4   :  { %1854 = vmatprep.mubr.bf16.mxu0 %v3017_v29 }
 0x4bb   :  { %1855 = vmatmul.mubr.bf16.gmra.mrb[140].mxu0 %v3018_v9 }
 0x4bc   :  { %1862 = vmatprep.mubr.bf16.mxu0 %v3019_v39 }
 0x4c3   :  { %1863 = vmatmul.mubr.bf16.gmra.mrb[144].mxu0 %v3020_v14 }
 0x4c4   :  { %1870 = vmatprep.mubr.bf16.mxu0 %v3021_v55 }
 0x4cb   :  { %1871 = vmatmul.mubr.bf16.gmra.mrb[148].mxu0 %v3022_v12 }
 0x4cc   :  { %1878 = vmatprep.mubr.bf16.mxu0 %v3619_v42  ;;  %v3023_v42 = vld [vmem:[%s4125_s0 + $0xf0] ss:$8 sps:$4 sm:$0xff]  }
 0x4d3   :  { %1879 = vmatmul.mubr.bf16.gmra.mrb[152].mxu0 %v3631_v45  ;;  %v3947_v45 = vld [vmem:[%s4132_s8] ss:$0 sm:$0xff] }
 0x4d4   :  { %1886 = vmatprep.mubr.bf16.mxu0 %v3637_v46  ;;  %v1635_v16 = vadd.f32 %v3947_v45, %v3811_v26  ;;  %v1640_v19 = vadd.f32 %v3805_v15, %v3947_v45  ;;  %v1643_v26 = vadd.f32 %v3809_v5, %v3947_v45  ;;  %v1648_v29 = vadd.f32 %v3947_v45, %v3821_v41 }
 0x4d5   :  { %v1651_v14 = vadd.f32 %v3947_v45, %v3825_v52 }
 0x4db   :  { %1887 = vmatmul.mubr.bf16.gmra.mrb[156].mxu0 %v3649_v49 }
 0x4dc   :  { %1894 = vmatprep.mubr.bf16.mxu0 %v3655_v50  ;;  %v1632_v50 = vadd.f32 %v3947_v45, %v3807_v34 }
 0x4e3   :  { %1895 = vmatmul.mubr.bf16.gmra.mrb[160].mxu0 %v3664_v56 }
 0x4e4   :  { %1902 = vmatprep.mubr.bf16.mxu0 %v3670_v10 }
 0x4eb   :  { %1903 = vmatmul.mubr.bf16.gmra.mrb[164].mxu0 %v3676_v59  ;;  %v3954_v59 = vld [vmem:[%s4133_s9] sm:$0xff] }
 0x4ec   :  { %1910 = vmatprep.mubr.bf16.mxu0 %v3682_v63  ;;  %v2183_v51 = vcombine.high %v3954_v59, %v3954_v59 }
 0x4ee   :  { %1975 = vmatprep.mubr.bf16.mxu1 %v2183_v51 }
 0x4f3   :  { %1911 = vmatmul.mubr.bf16.gmra.mrb[168].mxu0 %v3023_v42 }
 0x54e   :  { %v2529_v46 = vpop.f32.mrb[108].mxu0 }
 0x54f   :  { %v2530_v49 = vpop.f32.mrb[109].mxu0 }
 0x550   :  { %v2531_v56 = vadd.f32 %v2530_v49, %v2529_v46  ;;  %v2532_v10 = vpop.f32.mrb[110].mxu0 }
 0x551   :  { %v2533_v63 = vpop.f32.mrb[111].mxu0 }
 0x552   :  { %v3960_v24 = vadd.f32 %v2531_v56, %v1632_v50  ;;  %v2534_v58 = vadd.f32 %v2533_v63, %v2532_v10  ;;  %v1656_v50 = vadd.f32 %v3819_v25, %v3947_v45  ;;  %v1659_v63 = vadd.f32 %v3823_v8, %v3947_v45 }
 0x554   :  { %v3962_v47 = vadd.f32 %v2534_v58, %v1635_v16 }
 0x556   :  { %v1920_v34 = vpack.c.bf16 %v3962_v47, %v3960_v24  ;;  %v2535_v21 = vpop.f32.mrb[112].mxu0 }
 0x557   :  { %v2536_v44 = vpop.f32.mrb[113].mxu0 }
 0x558   :  { %v2537_v38 = vadd.f32 %v2536_v44, %v2535_v21  ;;  %v2538_v3 = vpop.f32.mrb[114].mxu0 }
 0x559   :  { %v2539_v0 = vpop.f32.mrb[115].mxu0 }
 0x55a   :  { %v3970_v7 = vadd.f32 %v2537_v38, %v1640_v19  ;;  %v2540_v35 = vadd.f32 %v2539_v0, %v2538_v3  ;;  %v1664_v19 = vadd.f32 %v3947_v45, %v3835_v37  ;;  %v1667_v0 = vadd.f32 %v3947_v45, %v3839_v61 }
 0x55c   :  { %v3972_v4 = vadd.f32 %v2540_v35, %v1643_v26 }
 0x55e   :  { %v1921_v20 = vpack.c.bf16 %v3972_v4, %v3970_v7  ;;  %v2541_v31 = vpop.f32.mrb[116].mxu0 }
 0x55f   :  { %v2542_v11 = vpop.f32.mrb[117].mxu0 }
 0x560   :  { %v2543_v15 = vadd.f32 %v2542_v11, %v2541_v31  ;;  %v2544_v9 = vpop.f32.mrb[118].mxu0 }
 0x561   :  { %v2545_v39 = vpop.f32.mrb[119].mxu0 }
 0x562   :  { %v3980_v5 = vadd.f32 %v2543_v15, %v1648_v29  ;;  %v2546_v55 = vadd.f32 %v2545_v39, %v2544_v9  ;;  %v1672_v15 = vadd.f32 %v3833_v48, %v3947_v45 }
 0x564   :  { %v3982_v12 = vadd.f32 %v2546_v55, %v1651_v14  ;;  %v1675_v14 = vadd.f32 %v3837_v6, %v3947_v45 }
 0x566   :  { %v1922_v42 = vpack.c.bf16 %v3982_v12, %v3980_v5  ;;  %v2547_v46 = vpop.f32.mrb[120].mxu0 }
 0x567   :  { %v2548_v49 = vpop.f32.mrb[121].mxu0 }
 0x568   :  { %v2549_v41 = vadd.f32 %v2548_v49, %v2547_v46  ;;  %v2550_v56 = vpop.f32.mrb[122].mxu0 }
 0x569   :  { %v2551_v10 = vpop.f32.mrb[123].mxu0 }
 0x56a   :  { %v3990_v52 = vadd.f32 %v2549_v41, %v1656_v50  ;;  %v2552_v51 = vadd.f32 %v2551_v10, %v2550_v56  ;;  %v1680_v56 = vadd.f32 %v3947_v45, %v3849_v43 }
 0x56c   :  { %v3992_v16 = vadd.f32 %v2552_v51, %v1659_v63  ;;  %v1683_v51 = vadd.f32 %v3947_v45, %v3853_v33 }
 0x56e   :  { %v1923_v58 = vpack.c.bf16 %v3992_v16, %v3990_v52  ;;  %v2553_v21 = vpop.f32.mrb[124].mxu0 }
 0x56f   :  { %v2554_v44 = vpop.f32.mrb[125].mxu0 }
 0x570   :  { %v2555_v25 = vadd.f32 %v2554_v44, %v2553_v21  ;;  %v2556_v38 = vpop.f32.mrb[126].mxu0 }
 0x571   :  { %v2557_v3 = vpop.f32.mrb[127].mxu0 }
 0x572   :  { %v4000_v8 = vadd.f32 %v2555_v25, %v1664_v19  ;;  %v2558_v26 = vadd.f32 %v2557_v3, %v2556_v38  ;;  %v1688_v3 = vadd.f32 %v3847_v32, %v3947_v45 }
 0x574   :  { %v4002_v35 = vadd.f32 %v2558_v26, %v1667_v0 }
 0x576   :  { %v1924_v31 = vpack.c.bf16 %v4002_v35, %v4000_v8  ;;  %v2559_v11 = vpop.f32.mrb[128].mxu0 }
 0x577   :  { %v2560_v29 = vpop.f32.mrb[129].mxu0 }
 0x578   :  { %v2561_v37 = vadd.f32 %v2560_v29, %v2559_v11  ;;  %v2562_v9 = vpop.f32.mrb[130].mxu0  ;;  %v1691_v11 = vadd.f32 %v3851_v2, %v3947_v45 }
 0x579   :  { %v2563_v39 = vpop.f32.mrb[131].mxu0 }
 0x57a   :  { %v4010_v61 = vadd.f32 %v2561_v37, %v1672_v15  ;;  %v2564_v55 = vadd.f32 %v2563_v39, %v2562_v9 }
 0x57c   :  { %v4012_v46 = vadd.f32 %v2564_v55, %v1675_v14  ;;  %v1696_v14 = vadd.f32 %v3947_v45, %v3863_v53  ;;  %v1707_v53 = vadd.f32 %v3865_v13, %v3947_v45  ;;  %v1715_v13 = vadd.f32 %v3947_v45, %v3881_v30 }
 0x57d   :  { %v1723_v30 = vadd.f32 %v3879_v18, %v3947_v45  ;;  %v1731_v18 = vadd.f32 %v3947_v45, %v3895_v22  ;;  %v1739_v22 = vadd.f32 %v3893_v28, %v3947_v45  ;;  %v1747_v28 = vadd.f32 %v3947_v45, %v3909_v36 }
 0x57e   :  { %v1925_v49 = vpack.c.bf16 %v4012_v46, %v4010_v61  ;;  %v2565_v50 = vpop.f32.mrb[132].mxu0  ;;  %v1755_v36 = vadd.f32 %v3907_v17, %v3947_v45  ;;  %v2985_v17 = vld [vmem:[%s4134_s10 + $0x8] sm:$0xff]  }
 0x57f   :  { %v2566_v41 = vpop.f32.mrb[133].mxu0 }
 0x580   :  { %v2567_v48 = vadd.f32 %v2566_v41, %v2565_v50  ;;  %v2568_v10 = vpop.f32.mrb[134].mxu0  ;;  %v1699_v41 = vadd.f32 %v3947_v45, %v3867_v40 }
 0x581   :  { %v2569_v63 = vpop.f32.mrb[135].mxu0 }
 0x582   :  { %v4020_v6 = vadd.f32 %v2567_v48, %v1680_v56  ;;  %v2570_v21 = vadd.f32 %v2569_v63, %v2568_v10 }
 0x584   :  { %v4022_v44 = vadd.f32 %v2570_v21, %v1683_v51  ;;  %v1704_v21 = vadd.f32 %v3861_v27, %v3947_v45  ;;  %v1712_v27 = vadd.f32 %v3947_v45, %v3877_v23  ;;  %v1720_v23 = vadd.f32 %v3875_v57, %v3947_v45 }
 0x585   :  { %v1728_v57 = vadd.f32 %v3947_v45, %v3891_v1  ;;  %v1736_v1 = vadd.f32 %v3889_v62, %v3947_v45  ;;  %v1744_v62 = vadd.f32 %v3947_v45, %v3905_v60  ;;  %v1752_v60 = vadd.f32 %v3903_v54, %v3947_v45  ;;  %v2984_v54 = vld [vmem:[%s4134_s10] sm:$0xff]   ;;  %v2986_v45 = vld [vmem:[%s4134_s10 + $0x10] sm:$0xff]  }
 0x586   :  { %v1926_v19 = vpack.c.bf16 %v4022_v44, %v4020_v6  ;;  %v2571_v25 = vpop.f32.mrb[136].mxu0  ;;  %v3024_v6 = vmov 0.0   ;;  %v2988_v44 = vld [vmem:[%s4134_s10 + $0x20] sm:$0xff]  }
 0x587   :  { %v2572_v38 = vpop.f32.mrb[137].mxu0 }
 0x588   :  { %v2573_v43 = vadd.f32 %v2572_v38, %v2571_v25  ;;  %v2574_v0 = vpop.f32.mrb[138].mxu0 }
 0x589   :  { %v2575_v26 = vpop.f32.mrb[139].mxu0 }
 0x58a   :  { %v4030_v33 = vadd.f32 %v2573_v43, %v1688_v3  ;;  %v2576_v29 = vadd.f32 %v2575_v26, %v2574_v0 }
 0x58c   :  { %v4032_v15 = vadd.f32 %v2576_v29, %v1691_v11 }
 0x58e   :  { %v1927_v37 = vpack.c.bf16 %v4032_v15, %v4030_v33  ;;  %v2577_v9 = vpop.f32.mrb[140].mxu0  ;;  %v2990_v33 = vld [vmem:[%s4134_s10 + $0x30] sm:$0xff]   ;;  %v2991_v15 = vld [vmem:[%s4134_s10 + $0x38] sm:$0xff]  }
 0x58f   :  { %v2578_v39 = vpop.f32.mrb[141].mxu0 }
 0x590   :  { %v2579_v32 = vadd.f32 %v2578_v39, %v2577_v9  ;;  %v2580_v55 = vpop.f32.mrb[142].mxu0 }
 0x591   :  { %v2581_v50 = vpop.f32.mrb[143].mxu0 }
 0x592   :  { %v1857_v2 = vadd.f32 %v2579_v32, %v1696_v14  ;;  %v2582_v56 = vadd.f32 %v2581_v50, %v2580_v55 }
 0x594   :  { %v1860_v48 = vadd.f32 %v2582_v56, %v1699_v41 }
 0x596   :  { %v2583_v10 = vpop.f32.mrb[144].mxu0  ;;  %v1928_v63 = vpack.c.bf16 %v1860_v48, %v1857_v2 }
 0x597   :  { %v2584_v51 = vpop.f32.mrb[145].mxu0 }
 0x598   :  { %v2585_v25 = vadd.f32 %v2584_v51, %v2583_v10  ;;  %v2586_v38 = vpop.f32.mrb[146].mxu0  ;;  %2625 = vmatprep.subr.bf16.mxu1 %v1928_v63 }
 0x599   :  { %v2587_v3 = vpop.f32.mrb[147].mxu0  ;;  %2626 = vmatpush3.bf16.msra.mxu1 %v1920_v34 }
 0x59a   :  { %v1865_v40 = vadd.f32 %v2585_v25, %v1704_v21  ;;  %v2588_v43 = vadd.f32 %v2587_v3, %v2586_v38 }
 0x59c   :  { %v1868_v0 = vadd.f32 %v2588_v43, %v1707_v53 }
 0x59e   :  { %v2589_v26 = vpop.f32.mrb[148].mxu0  ;;  %v1929_v11 = vpack.c.bf16 %v1868_v0, %v1865_v40 }
 0x59f   :  { %v2590_v29 = vpop.f32.mrb[149].mxu0 }
 0x5a0   :  { %v2591_v9 = vadd.f32 %v2590_v29, %v2589_v26  ;;  %v2592_v39 = vpop.f32.mrb[150].mxu0  ;;  %2627 = vmatprep.subr.bf16.mxu1 %v1929_v11 }
 0x5a1   :  { %v2593_v14 = vpop.f32.mrb[151].mxu0  ;;  %2628 = vmatpush3.bf16.msra.mxu1 %v1921_v20 }
 0x5a2   :  { %v1873_v24 = vadd.f32 %v2591_v9, %v1712_v27  ;;  %v2594_v47 = vadd.f32 %v2593_v14, %v2592_v39 }
 0x5a4   :  { %v1876_v34 = vadd.f32 %v2594_v47, %v1715_v13 }
 0x5a6   :  { %v2595_v32 = vpop.f32.mrb[152].mxu0  ;;  %v1930_v55 = vpack.c.bf16 %v1876_v34, %v1873_v24 }
 0x5a7   :  { %v2596_v50 = vpop.f32.mrb[153].mxu0 }
 0x5a8   :  { %v2597_v41 = vadd.f32 %v2596_v50, %v2595_v32  ;;  %v2598_v2 = vpop.f32.mrb[154].mxu0  ;;  %2629 = vmatprep.subr.bf16.mxu1 %v1930_v55  ;;  %v2182_v50 = vcombine.low %v3954_v59, %v3954_v59  ;;  %v2987_v59 = vld [vmem:[%s4134_s10 + $0x18] sm:$0xff]  }
 0x5a9   :  { %v2599_v56 = vpop.f32.mrb[155].mxu0  ;;  %2630 = vmatpush3.bf16.msra.mxu1 %v1922_v42 }
 0x5aa   :  { %v1881_v7 = vadd.f32 %v2597_v41, %v1720_v23  ;;  %v2600_v4 = vadd.f32 %v2599_v56, %v2598_v2 }
 0x5ac   :  { %v1884_v20 = vadd.f32 %v2600_v4, %v1723_v30 }
 0x5ae   :  { %v2601_v48 = vpop.f32.mrb[156].mxu0  ;;  %v1931_v10 = vpack.c.bf16 %v1884_v20, %v1881_v7  ;;  %v2184_v7 = vld [vmem:[%s4135_s11] ss:$0 sm:$0xff] }
 0x5af   :  { %v2602_v63 = vpop.f32.mrb[157].mxu0 }
 0x5b0   :  { %v2603_v51 = vadd.f32 %v2602_v63, %v2601_v48  ;;  %v2604_v21 = vpop.f32.mrb[158].mxu0  ;;  %2631 = vmatprep.subr.bf16.mxu1 %v1931_v10 }
 0x5b1   :  { %v2605_v25 = vpop.f32.mrb[159].mxu0  ;;  %2632 = vmatpush3.bf16.msra.mxu1 %v1923_v58 }
 0x5b2   :  { %v1889_v5 = vadd.f32 %v2603_v51, %v1728_v57  ;;  %v2606_v12 = vadd.f32 %v2605_v25, %v2604_v21 }
 0x5b4   :  { %v1892_v42 = vadd.f32 %v2606_v12, %v1731_v18 }
 0x5b6   :  { %v2607_v38 = vpop.f32.mrb[160].mxu0  ;;  %v1932_v3 = vpack.c.bf16 %v1892_v42, %v1889_v5 }
 0x5b7   :  { %v2608_v53 = vpop.f32.mrb[161].mxu0 }
 0x5b8   :  { %v2609_v40 = vadd.f32 %v2608_v53, %v2607_v38  ;;  %v2610_v43 = vpop.f32.mrb[162].mxu0  ;;  %2633 = vmatprep.subr.bf16.mxu1 %v1932_v3 }
 0x5b9   :  { %v2611_v0 = vpop.f32.mrb[163].mxu0  ;;  %2634 = vmatpush3.bf16.msra.mxu1 %v1924_v31 }
 0x5ba   :  { %v1897_v52 = vadd.f32 %v2609_v40, %v1736_v1  ;;  %v2612_v16 = vadd.f32 %v2611_v0, %v2610_v43 }
 0x5bc   :  { %v1900_v58 = vadd.f32 %v2612_v16, %v1739_v22 }
 0x5be   :  { %v2613_v26 = vpop.f32.mrb[164].mxu0  ;;  %v1933_v11 = vpack.c.bf16 %v1900_v58, %v1897_v52 }
 0x5bf   :  { %v2614_v29 = vpop.f32.mrb[165].mxu0 }
 0x5c0   :  { %v2615_v27 = vadd.f32 %v2614_v29, %v2613_v26  ;;  %v2616_v9 = vpop.f32.mrb[166].mxu0  ;;  %2635 = vmatprep.subr.bf16.mxu1 %v1933_v11 }
 0x5c1   :  { %v2617_v39 = vpop.f32.mrb[167].mxu0  ;;  %2636 = vmatpush3.bf16.msra.mxu1 %v1925_v49 }
 0x5c2   :  { %v1905_v8 = vadd.f32 %v2615_v27, %v1744_v62  ;;  %v2618_v35 = vadd.f32 %v2617_v39, %v2616_v9 }
 0x5c4   :  { %v1908_v31 = vadd.f32 %v2618_v35, %v1747_v28 }
 0x5c6   :  { %v2619_v14 = vpop.f32.mrb[168].mxu0  ;;  %v1934_v13 = vpack.c.bf16 %v1908_v31, %v1905_v8 }
 0x5c7   :  { %v2620_v24 = vpop.f32.mrb[169].mxu0 }
 0x5c8   :  { %v2621_v47 = vadd.f32 %v2620_v24, %v2619_v14  ;;  %v2622_v34 = vpop.f32.mrb[170].mxu0  ;;  %2637 = vmatprep.subr.bf16.mxu1 %v1934_v13 }
 0x5c9   :  { %v2623_v32 = vpop.f32.mrb[171].mxu0  ;;  %2638 = vmatpush3.bf16.msra.mxu1 %v1926_v19  ;;  %v2989_v19 = vld [vmem:[%s4134_s10 + $0x28] sm:$0xff]  }
 0x5ca   :  { %v1913_v61 = vadd.f32 %v2621_v47, %v1752_v60  ;;  %v2624_v46 = vadd.f32 %v2623_v32, %v2622_v34 }
 0x5cc   :  { %v1916_v49 = vadd.f32 %v2624_v46, %v1755_v36 }
 0x5ce   :  { %v1935_v55 = vpack.c.bf16 %v1916_v49, %v1913_v61 }
 0x5d0   :  { %2639 = vmatprep.subr.bf16.mxu1 %v1935_v55 }
 0x5d1   :  { %2640 = vmatpush3.bf16.msra.mxu1 %v1927_v37 }
 0x5d2   :  { %2848 = vmatprep.subr.bf16.mxu1 %v3024_v6 }
 0x5d4   :  { %1976 = vmatmul.mubr.bf16.vlgmr.msra.gmra.mrb[148].mxu1 %v2182_v50 }
 0x5d5   :  { %2849 = vmatpush3.bf16.msra.mxu1 %v2984_v54  ;;  %2864 = vmatprep.mubr.msk.bf16.mxu1 %vm3025_vm0, %v3024_v6 }
 0x5d6   :  { %2850 = vmatprep.subr.bf16.mxu1 %v3024_v6 }
 0x5d9   :  { %2851 = vmatpush3.bf16.msra.mxu1 %v2985_v17 }
 0x5da   :  { %2852 = vmatprep.subr.bf16.mxu1 %v3024_v6 }
 0x5dd   :  { %2853 = vmatpush3.bf16.msra.mxu1 %v2986_v45 }
 0x5de   :  { %2854 = vmatprep.subr.bf16.mxu1 %v3024_v6 }
 0x5e1   :  { %2855 = vmatpush3.bf16.msra.mxu1 %v2987_v59 }
 0x5e2   :  { %2856 = vmatprep.subr.bf16.mxu1 %v3024_v6 }
 0x5e5   :  { %2857 = vmatpush3.bf16.msra.mxu1 %v2988_v44 }
 0x5e6   :  { %2858 = vmatprep.subr.bf16.mxu1 %v3024_v6 }
 0x5e9   :  { %2859 = vmatpush3.bf16.msra.mxu1 %v2989_v19 }
 0x5ea   :  { %2860 = vmatprep.subr.bf16.mxu1 %v3024_v6 }
 0x5ed   :  { %2861 = vmatpush3.bf16.msra.mxu1 %v2990_v33 }
 0x5ee   :  { %2862 = vmatprep.subr.bf16.mxu1 %v3024_v6 }
 0x5f1   :  { %2863 = vmatpush3.bf16.msra.mxu1 %v2991_v15 }
 0x6a7   :  { %v2641_v37 = vpop.f32.mrb[148].mxu1 }
 0x6a8   :  { %v2642_v23 = vpop.f32.mrb[149].mxu1 }
 0x6a9   :  { %v2643_v41 = vadd.f32 %v2642_v23, %v2641_v37  ;;  %v2644_v2 = vpop.f32.mrb[150].mxu1 }
 0x6aa   :  { %v2645_v56 = vpop.f32.mrb[151].mxu1 }
 0x6ab   :  { %v1983_v30 = vpack.c.bf16 %v2643_v41, %v2643_v41 }
 0x6ad   :  { %2865 = vmatmul.mubr.bf16.vlgmr.msra.gmra.mrb[152].mxu1 %v1983_v30 }
 0x780   :  { %v2089_v4 = vpop.f32.mrb[152].mxu1 }
 0x781   :  { %v2090_v20 = vadd.f32 %v2184_v7, %v2089_v4  ;;  %v2866_v48 = vpop.f32.mrb[153].mxu1 }
 0x782   :  { %v2092_v10 = vpop.f32.mrb[154].mxu1 }
 0x783   :  { %2095 = vst [vmem:[%s4136_s12] sm:$0xff] %v2090_v20  ;;  %v2867_v63 = vpop.f32.mrb[155].mxu1 }

</bundles_post_ra>
